<compile_context>
chip_gen: v6e
topology: v6e:2x2x1
jax: 0.10.0
libtpu: 0.0.40
codegen_flags: <defaults>
</compile_context>

<pallas_src>
import math

import jax
import jax.numpy as jnp
from jax import lax
from jax.experimental import pallas as pl
from jax.experimental.pallas import tpu as pltpu

# ------------------------- config (small, consistent with the module) -------
BATCH = 2
SEQ = 8
HIDDEN = 32
INTER = 32            # must equal HIDDEN (reference MLP elementwise mult)
NUM_HEADS = 2
NUM_KV_HEADS = 2      # must equal NUM_HEADS (reference attention einsum)
HEAD_DIM = 16         # NUM_HEADS * HEAD_DIM // 2 == HEAD_DIM (rotary broadcast)
NUM_LAYERS = 2
EPS = 1e-6
ROPE_THETA = 10000.0
NEG_INF = -1e9
ATT_SCALE = HEAD_DIM ** -0.5   # folded into the Q weight columns at pack time

BS = BATCH * SEQ                  # rows after folding batch into M
QW = NUM_HEADS * HEAD_DIM         # 32  flat q/k/v width
HALF = QW // 2                    # 16  rotate_half split point of the flat projection
QKW = 2 * QW                      # 64  [q|k]
QKVW = 3 * QW                     # 96  [q|k|v]
QKVRW = 5 * QW                    # 160 [q|k|v|rotcols(q)|rotcols(k)]
GUW = HIDDEN + INTER              # 64  [gate|up]
VECW = QKVRW                      # 160 packed bias/LN-scale row width


# ------------------------- fused Pallas kernel -------------------------------
def _gemma_fused_kernel(x_ref, rope_ref, mask_ref, fscale_ref,
                        wqkvr_ref, wo_ref, wgu_ref, wd_ref, vec_ref,
                        out_ref):
    layer = pl.program_id(0)

    # Layer 0: seed the resident hidden-state block with scaled embeddings.
    @pl.when(layer == 0)
    def _():
        out_ref[...] = x_ref[...] * jnp.float32(HIDDEN ** 0.5)

    h = out_ref[...]                                   # (BS, H) f32 residual stream

    vec = vec_ref[0]                                   # (8, VECW) packed f32 vectors
    b_qkvr = vec[0:1, :]                               # (1, 160)
    ln1 = vec[1:2, :HIDDEN]                            # (1, 32)
    ln2 = vec[2:3, :HIDDEN]
    bo = vec[3:4, :HIDDEN]
    bgu = vec[4:5, :GUW]                               # (1, 64)
    bd = vec[5:6, :HIDDEN]

    # ---- input RMSNorm (f32, rsqrt on the EUP) ----
    xn = h * lax.rsqrt(jnp.mean(h * h, axis=-1, keepdims=True) + EPS) * ln1

    # ---- fused QKV (+ pre-permuted QK columns for rotary) in one bf16 matmul ----
    qkvr = jnp.dot(xn.astype(jnp.bfloat16), wqkvr_ref[0],
                   preferred_element_type=jnp.float32) + b_qkvr    # (BS, 160)

    cosw = rope_ref[:, :QKW]                                       # (BS, 64)
    sinw = rope_ref[:, QKW:]
    # rotate_half on the flat [q|k]: rot(x) = cos*x + sin*(x @ R); x@R is precomputed
    # as extra weight columns, so no lane slice/concat relayout is needed here.
    # Q columns already carry the 1/sqrt(head_dim) scale.
    qk = cosw * qkvr[:, :QKW] + sinw * qkvr[:, QKVW:QKVW + QKW]    # rotated [q_s|k]
    v = qkvr[:, QKW:QKVW]                                          # (BS, 32)

    # ---- per-head attention; batch folded into rows via block-diagonal mask ----
    mask = mask_ref[...]                                           # (BS, BS) additive
    wo = wo_ref[0]                                                 # (32, H) bf16
    attn = None
    for hd in range(NUM_HEADS):
        qh = qk[:, hd * HEAD_DIM:(hd + 1) * HEAD_DIM]              # pre-scaled q
        kh = qk[:, QW + hd * HEAD_DIM: QW + (hd + 1) * HEAD_DIM]
        vh = v[:, hd * HEAD_DIM:(hd + 1) * HEAD_DIM]
        s = lax.dot_general(qh.astype(jnp.bfloat16), kh.astype(jnp.bfloat16),
                            (((1,), (1,)), ((), ())),
                            preferred_element_type=jnp.float32) + mask
        s = s - jnp.max(s, axis=-1, keepdims=True)
        p = jnp.exp(s)
        p = p * pl.reciprocal(jnp.sum(p, axis=-1, keepdims=True), approx=True)
        ctx = jnp.dot(p.astype(jnp.bfloat16), vh.astype(jnp.bfloat16),
                      preferred_element_type=jnp.float32)          # (BS, HD)
        # fold the head concat into o_proj: attn_out = sum_h ctx_h @ Wo[h*HD:(h+1)*HD]
        part = jnp.dot(ctx.astype(jnp.bfloat16),
                       wo[hd * HEAD_DIM:(hd + 1) * HEAD_DIM, :],
                       preferred_element_type=jnp.float32)         # (BS, H)
        attn = part if attn is None else attn + part

    h1 = h + attn + bo
    h2 = h1 * lax.rsqrt(jnp.mean(h1 * h1, axis=-1, keepdims=True) + EPS) * ln2

    # ---- MLP: down( gelu_tanh(gate(x)) * up(x) ), gate/up fused ----
    gu = jnp.dot(h2.astype(jnp.bfloat16), wgu_ref[0],
                 preferred_element_type=jnp.float32) + bgu         # (BS, 64)
    g = gu[:, :HIDDEN]
    u = gu[:, HIDDEN:]
    c = jnp.float32(math.sqrt(2.0 / math.pi))
    g = 0.5 * g * (1.0 + jnp.tanh(c * (g + 0.044715 * g * g * g)))
    d = jnp.dot((g * u).astype(jnp.bfloat16), wd_ref[0],
                preferred_element_type=jnp.float32) + bd
    h_new = h2 + d

    @pl.when(layer < NUM_LAYERS - 1)
    def _():
        out_ref[...] = h_new                                       # carry to next layer

    @pl.when(layer == NUM_LAYERS - 1)
    def _():
        out_ref[...] = (h_new
                        * lax.rsqrt(jnp.mean(h_new * h_new, axis=-1, keepdims=True) + EPS)
                        * fscale_ref[...])                         # final RMSNorm


# ------------------------- host-side packing / wrapper ------------------------
def _rope_cos_sin(position_ids):
    # glue: GemmaRotaryEmbedding frequencies, plain JAX (tiny, done once on host)
    inv_freq = 1.0 / (ROPE_THETA ** (jnp.arange(0, HEAD_DIM, 2, dtype=jnp.float32)
                                     / HEAD_DIM))                  # (HEAD_DIM/2,)
    freqs = position_ids.astype(jnp.float32)[:, :, None] * inv_freq[None, None, :]
    emb = jnp.concatenate([freqs, freqs], axis=-1)                 # (B, S, HEAD_DIM)
    return jnp.cos(emb), jnp.sin(emb)


def _rotperm_cols(w):
    # Columns of W @ R, where R maps x -> concat([-x2, x1]) (rotate_half permutation).
    return jnp.concatenate([-w[:, HALF:], w[:, :HALF]], axis=-1)


def _pad_row(x, width=VECW):
    return jnp.pad(x, ((0, 0), (0, width - x.shape[-1])))


def pack_layer_params(layer_params):
    """Stack per-layer weights with a leading layer dim; fuse QKV(+rot) and gate/up;
    fold 1/sqrt(head_dim) into the Q columns; pack all biases + LN scales into one
    (L, 8, VECW) f32 array."""
    wqkvr, wo, wgu, wd, vecs = [], [], [], [], []
    for (wq, bq, wk, bk, wv, bv, wo_, bo, wg, bg, wu, bu, wd_, bd, ln1, ln2) in layer_params:
        wq_s = wq * jnp.float32(ATT_SCALE)          # fold attention scale into Q
        bq_s = bq * jnp.float32(ATT_SCALE)
        wqkvr.append(jnp.concatenate(
            [wq_s, wk, wv, _rotperm_cols(wq_s), _rotperm_cols(wk)], axis=-1))   # (H,160)
        b_qkvr = jnp.concatenate(
            [bq_s, bk, bv, _rotperm_cols(bq_s), _rotperm_cols(bk)], axis=-1)    # (1,160)
        wo.append(wo_)
        wgu.append(jnp.concatenate([wg, wu], axis=-1))                          # (H, 64)
        wd.append(wd_)
        b_gu = jnp.concatenate([bg, bu], axis=-1)
        vecs.append(jnp.concatenate(
            [_pad_row(b_qkvr), _pad_row(ln1), _pad_row(ln2), _pad_row(bo),
             _pad_row(b_gu), _pad_row(bd),
             jnp.zeros((2, VECW), jnp.float32)], axis=0))                       # (8, 160)
    to_bf16 = lambda xs: jnp.stack(xs).astype(jnp.bfloat16)
    return (to_bf16(wqkvr), to_bf16(wo), to_bf16(wgu), to_bf16(wd),
            jnp.stack(vecs).astype(jnp.float32))


def gemma_model_forward(inputs_embeds, attention_mask, position_ids,
                        layer_params, final_norm_scale):
    B, S, H = inputs_embeds.shape
    cos, sin = _rope_cos_sin(position_ids)                         # (B, S, HEAD_DIM)
    cosw = jnp.tile(cos.reshape(B * S, HEAD_DIM), (1, QKW // HEAD_DIM))
    sinw = jnp.tile(sin.reshape(B * S, HEAD_DIM), (1, QKW // HEAD_DIM))
    rope = jnp.concatenate([cosw, sinw], axis=-1)                  # (BS, 128) lane-dense

    # Block-diagonal additive mask so batch can be folded into the matmul M dim;
    # cross-batch entries get -1e9 -> exp underflows to exactly 0 after softmax.
    batch_id = jnp.arange(B * S, dtype=jnp.int32) // S
    key_mask = attention_mask.reshape(-1)                          # (BS,)
    mask_full = jnp.where(batch_id[:, None] == batch_id[None, :],
                          key_mask[None, :], NEG_INF).astype(jnp.float32)

    x2d = inputs_embeds.reshape(B * S, H).astype(jnp.float32)
    fscale = final_norm_scale.reshape(1, H).astype(jnp.float32)

    wqkvr, wo, wgu, wd, vecs = pack_layer_params(layer_params)

    out2d = pl.pallas_call(
        _gemma_fused_kernel,
        out_shape=jax.ShapeDtypeStruct((B * S, H), jnp.float32),
        grid=(NUM_LAYERS,),
        in_specs=[
            pl.BlockSpec((B * S, H), lambda l: (0, 0)),            # embeddings (layer 0)
            pl.BlockSpec((B * S, 2 * QKW), lambda l: (0, 0)),      # rope [cos|sin]
            pl.BlockSpec((B * S, B * S), lambda l: (0, 0)),        # additive mask
            pl.BlockSpec((1, H), lambda l: (0, 0)),                # final norm scale
            pl.BlockSpec((1, H, QKVRW), lambda l: (l, 0, 0)),      # fused qkv(+rot) W
            pl.BlockSpec((1, QW, H), lambda l: (l, 0, 0)),         # o_proj W
            pl.BlockSpec((1, H, GUW), lambda l: (l, 0, 0)),        # fused gate/up W
            pl.BlockSpec((1, INTER, H), lambda l: (l, 0, 0)),      # down_proj W
            pl.BlockSpec((1, 8, VECW), lambda l: (l, 0, 0)),       # packed biases / LN
        ],
        # hidden state lives in this block across the whole layer loop
        out_specs=pl.BlockSpec((B * S, H), lambda l: (0, 0)),
        compiler_params=pltpu.CompilerParams(
            dimension_semantics=("arbitrary",)),                   # carried -> arbitrary
    )(x2d, rope, mask_full, fscale, wqkvr, wo, wgu, wd, vecs)

    return out2d.reshape(B, S, H)


# ------------------------- pure-JAX reference (for validation) ----------------
def _ref_rmsnorm(x, scale):
    ms = jnp.mean(x * x, axis=-1, keepdims=True)
    return scale * (x / jnp.sqrt(ms + EPS))


def ref_forward(x, attention_mask, position_ids, layer_params, final_scale):
    B, S, _ = x.shape
    cos, sin = _rope_cos_sin(position_ids)
    h = x * (HIDDEN ** 0.5)
    for (wq, bq, wk, bk, wv, bv, wo, bo, wg, bg, wu, bu, wd, bd, ln1, ln2) in layer_params:
        xn = _ref_rmsnorm(h, ln1)
        q = xn @ wq + bq
        k = xn @ wk + bk
        v = xn @ wv + bv

        def rot(t):
            half = t.shape[-1] // 2
            t1, t2 = t[..., :half], t[..., half:]
            return jnp.concatenate([cos * t1 - sin * t2, sin * t1 + cos * t2], axis=-1)

        q, k = rot(q), rot(k)
        qh = q.reshape(B, S, NUM_HEADS, HEAD_DIM)
        kh = k.reshape(B, S, NUM_KV_HEADS, HEAD_DIM)
        vh = v.reshape(B, S, NUM_KV_HEADS, HEAD_DIM)
        w = jnp.einsum('bnhd,bmhd->bhnm', qh, kh) * HEAD_DIM ** (-0.5)
        w = w + attention_mask[:, None, None, :]
        w = jax.nn.softmax(w, axis=-1)
        ao = jnp.einsum('bhnm,bmhd->bnhd', w, vh).reshape(B, S, NUM_KV_HEADS * HEAD_DIM)
        ao = ao @ wo + bo
        h = h + ao
        h = _ref_rmsnorm(h, ln2)
        g = h @ wg + bg
        u = h @ wu + bu
        c = math.sqrt(2.0 / math.pi)
        g = 0.5 * g * (1.0 + jnp.tanh(c * (g + 0.044715 * g ** 3)))
        h = h + ((g * u) @ wd + bd)
    return _ref_rmsnorm(h, final_scale)


# ------------------------- deterministic parameter init -----------------------
def init_layer_params(key):
    ks = jax.random.split(key, 14)

    def w(k, i, o):
        return jax.random.normal(k, (i, o), jnp.float32) * 0.02

    def b(k, o):
        return jax.random.normal(k, (1, o), jnp.float32) * 0.01

    wq = w(ks[0], HIDDEN, NUM_HEADS * HEAD_DIM);    bq = b(ks[1], NUM_HEADS * HEAD_DIM)
    wk = w(ks[2], HIDDEN, NUM_KV_HEADS * HEAD_DIM); bk = b(ks[3], NUM_KV_HEADS * HEAD_DIM)
    wv = w(ks[4], HIDDEN, NUM_KV_HEADS * HEAD_DIM); bv = b(ks[5], NUM_KV_HEADS * HEAD_DIM)
    wo = w(ks[6], NUM_KV_HEADS * HEAD_DIM, HIDDEN); bo = b(ks[7], HIDDEN)
    wg = w(ks[8], HIDDEN, HIDDEN);                  bg = b(ks[9], HIDDEN)
    wu = w(ks[10], HIDDEN, INTER);                  bu = b(ks[11], INTER)
    wd = w(ks[12], INTER, HIDDEN);                  bd = b(ks[13], HIDDEN)
    ln1 = jnp.ones((1, HIDDEN), jnp.float32)
    ln2 = jnp.ones((1, HIDDEN), jnp.float32)
    return (wq, bq, wk, bk, wv, bv, wo, bo, wg, bg, wu, bu, wd, bd, ln1, ln2)


# ------------------------- main ------------------------------------------------
if __name__ == "__main__":
    root = jax.random.PRNGKey(0)
    k_x, k_layers = jax.random.split(root)

    inputs_embeds = jax.random.normal(k_x, (BATCH, SEQ, HIDDEN), jnp.float32)
    position_ids = jnp.broadcast_to(jnp.arange(SEQ, dtype=jnp.int32), (BATCH, SEQ))
    # additive key-padding mask: batch 0 full length, batch 1 length 6
    lengths = jnp.array([SEQ, SEQ - 2], dtype=jnp.int32)
    attention_mask = jnp.where(jnp.arange(SEQ)[None, :] < lengths[:, None],
                               0.0, NEG_INF).astype(jnp.float32)

    layer_keys = jax.random.split(k_layers, NUM_LAYERS)
    layer_params = [init_layer_params(k) for k in layer_keys]
    final_norm_scale = jnp.ones((1, HIDDEN), jnp.float32)

    out = gemma_model_forward(inputs_embeds, attention_mask, position_ids,
                              layer_params, final_norm_scale)
    out = jax.block_until_ready(out)

    ref = ref_forward(inputs_embeds, attention_mask, position_ids,
                      layer_params, final_norm_scale)

    assert out.shape == (BATCH, SEQ, HIDDEN)
    assert bool(jnp.isfinite(out).all())
    max_err = float(jnp.max(jnp.abs(out - ref)))
    assert max_err < 5e-2, f"mismatch vs reference, max abs err = {max_err}"

    print("KERNEL_OK")
</pallas_src>

<mosaic_0001>
module attributes {stable_mosaic.version = 11 : i64} {
  func.func @_gemma_fused_kernel(%arg0: i32, %arg1: memref<16x32xf32, #tpu.memory_space<vmem>>, %arg2: memref<16x128xf32, #tpu.memory_space<vmem>>, %arg3: memref<16x16xf32, #tpu.memory_space<vmem>>, %arg4: memref<1x32xf32, #tpu.memory_space<vmem>>, %arg5: memref<1x32x160xbf16, #tpu.memory_space<vmem>>, %arg6: memref<1x32x32xbf16, #tpu.memory_space<vmem>>, %arg7: memref<1x32x64xbf16, #tpu.memory_space<vmem>>, %arg8: memref<1x32x32xbf16, #tpu.memory_space<vmem>>, %arg9: memref<1x8x160xf32, #tpu.memory_space<vmem>>, %arg10: memref<16x32xf32, #tpu.memory_space<vmem>>) attributes {dimension_semantics = [#tpu.dimension_semantics<arbitrary>], iteration_bounds = array<i64: 2>, scalar_prefetch = 0 : i64, scratch_operands = 0 : i64, tpu.core_type = #tpu.core_type<tc>, window_params = [{pipeline_mode = #tpu.pipeline_mode<synchronous>, transform_indices = @transform_0, window_bounds = array<i64: 16, 32>}, {pipeline_mode = #tpu.pipeline_mode<synchronous>, transform_indices = @transform_1, window_bounds = array<i64: 16, 128>}, {pipeline_mode = #tpu.pipeline_mode<synchronous>, transform_indices = @transform_2, window_bounds = array<i64: 16, 16>}, {pipeline_mode = #tpu.pipeline_mode<synchronous>, transform_indices = @transform_3, window_bounds = array<i64: 1, 32>}, {transform_indices = @transform_4, window_bounds = array<i64: 1, 32, 160>}, {transform_indices = @transform_5, window_bounds = array<i64: 1, 32, 32>}, {transform_indices = @transform_6, window_bounds = array<i64: 1, 32, 64>}, {transform_indices = @transform_7, window_bounds = array<i64: 1, 32, 32>}, {transform_indices = @transform_8, window_bounds = array<i64: 1, 8, 160>}, {pipeline_mode = #tpu.pipeline_mode<synchronous>, transform_indices = @transform_9, window_bounds = array<i64: 16, 32>}]} {
    %c0_i32 = arith.constant 0 : i32
    %0 = arith.cmpi eq, %arg0, %c0_i32 : i32
    %1 = arith.extui %0 : i1 to i32
    %c0_i32_0 = arith.constant 0 : i32
    %2 = arith.cmpi ne, %1, %c0_i32_0 : i32
    scf.if %2 {
      %c0_47 = arith.constant 0 : index
      %c0_48 = arith.constant 0 : index
      %138 = vector.load %arg1[%c0_47, %c0_48] : memref<16x32xf32, #tpu.memory_space<vmem>>, vector<16x32xf32>
      %cst_49 = arith.constant 5.65685415 : f32
      %139 = vector.broadcast %cst_49 : f32 to vector<16x32xf32>
      %140 = arith.mulf %138, %139 : vector<16x32xf32>
      %c0_50 = arith.constant 0 : index
      %c0_51 = arith.constant 0 : index
      %141 = vector.load %arg10[%c0_50, %c0_51] : memref<16x32xf32, #tpu.memory_space<vmem>>, vector<16x32xf32>
      tpu.vector_store %arg10[%c0_50, %c0_51], %140 {strides = array<i32>} : memref<16x32xf32, #tpu.memory_space<vmem>>, vector<16x32xf32>,
    } else {
    }
    %c0 = arith.constant 0 : index
    %c0_1 = arith.constant 0 : index
    %3 = vector.load %arg10[%c0, %c0_1] : memref<16x32xf32, #tpu.memory_space<vmem>>, vector<16x32xf32>
    %c0_2 = arith.constant 0 : index
    %c0_3 = arith.constant 0 : index
    %c0_4 = arith.constant 0 : index
    %4 = vector.load %arg9[%c0_2, %c0_3, %c0_4] : memref<1x8x160xf32, #tpu.memory_space<vmem>>, vector<1x8x160xf32>
    %5 = vector.shape_cast %4 : vector<1x8x160xf32> to vector<8x160xf32>
    %6 = vector.extract_strided_slice %5 {offsets = [0, 0], sizes = [1, 160], strides = [1, 1]} : vector<8x160xf32> to vector<1x160xf32>
    %7 = vector.extract_strided_slice %5 {offsets = [1, 0], sizes = [1, 32], strides = [1, 1]} : vector<8x160xf32> to vector<1x32xf32>
    %8 = vector.extract_strided_slice %5 {offsets = [2, 0], sizes = [1, 32], strides = [1, 1]} : vector<8x160xf32> to vector<1x32xf32>
    %9 = vector.extract_strided_slice %5 {offsets = [3, 0], sizes = [1, 32], strides = [1, 1]} : vector<8x160xf32> to vector<1x32xf32>
    %10 = vector.extract_strided_slice %5 {offsets = [4, 0], sizes = [1, 64], strides = [1, 1]} : vector<8x160xf32> to vector<1x64xf32>
    %11 = vector.extract_strided_slice %5 {offsets = [5, 0], sizes = [1, 32], strides = [1, 1]} : vector<8x160xf32> to vector<1x32xf32>
    %12 = arith.mulf %3, %3 : vector<16x32xf32>
    %cst = arith.constant dense<0.000000e+00> : vector<16xf32>
    %13 = vector.multi_reduction <add>, %12, %cst [1] : vector<16x32xf32> to vector<16xf32>
    %14 = vector.shape_cast %13 : vector<16xf32> to vector<16x1xf32>
    %cst_5 = arith.constant 3.200000e+01 : f32
    %15 = vector.broadcast %cst_5 : f32 to vector<16x1xf32>
    %16 = arith.divf %14, %15 : vector<16x1xf32>
    %cst_6 = arith.constant 9.99999997E-7 : f32
    %17 = vector.broadcast %cst_6 : f32 to vector<16x1xf32>
    %18 = arith.addf %16, %17 : vector<16x1xf32>
    %19 = math.rsqrt %18 : vector<16x1xf32>
    %20 = vector.broadcast %19 : vector<16x1xf32> to vector<16x32xf32>
    %21 = arith.mulf %3, %20 : vector<16x32xf32>
    %22 = vector.broadcast %7 : vector<1x32xf32> to vector<16x32xf32>
    %23 = arith.mulf %21, %22 : vector<16x32xf32>
    %24 = arith.truncf %23 : vector<16x32xf32> to vector<16x32xbf16>
    %c0_7 = arith.constant 0 : index
    %c0_8 = arith.constant 0 : index
    %c0_9 = arith.constant 0 : index
    %25 = vector.load %arg5[%c0_7, %c0_8, %c0_9] : memref<1x32x160xbf16, #tpu.memory_space<vmem>>, vector<1x32x160xbf16>
    %26 = vector.shape_cast %25 : vector<1x32x160xbf16> to vector<32x160xbf16>
    %cst_10 = arith.constant dense<0.000000e+00> : vector<16x160xf32>
    %27 = tpu.matmul %24, %26, %cst_10 {dimension_numbers = #tpu.dot_dimension_numbers<[1], [0], [0], [1], [0, 0, 1, 1], [], []>} : vector<16x32xbf16>, vector<32x160xbf16>, vector<16x160xf32> -> vector<16x160xf32>
    %28 = vector.broadcast %6 : vector<1x160xf32> to vector<16x160xf32>
    %29 = arith.addf %27, %28 : vector<16x160xf32>
    %c0_11 = arith.constant 0 : index
    %c0_12 = arith.constant 0 : index
    %30 = vector.load %arg2[%c0_11, %c0_12] : memref<16x128xf32, #tpu.memory_space<vmem>>, vector<16x64xf32>
    %c0_13 = arith.constant 0 : index
    %c64 = arith.constant 64 : index
    %31 = vector.load %arg2[%c0_13, %c64] : memref<16x128xf32, #tpu.memory_space<vmem>>, vector<16x64xf32>
    %32 = vector.extract_strided_slice %29 {offsets = [0, 0], sizes = [16, 64], strides = [1, 1]} : vector<16x160xf32> to vector<16x64xf32>
    %33 = arith.mulf %30, %32 : vector<16x64xf32>
    %34 = vector.extract_strided_slice %29 {offsets = [0, 96], sizes = [16, 64], strides = [1, 1]} : vector<16x160xf32> to vector<16x64xf32>
    %35 = arith.mulf %31, %34 : vector<16x64xf32>
    %36 = arith.addf %33, %35 : vector<16x64xf32>
    %37 = vector.extract_strided_slice %29 {offsets = [0, 64], sizes = [16, 32], strides = [1, 1]} : vector<16x160xf32> to vector<16x32xf32>
    %c0_14 = arith.constant 0 : index
    %c0_15 = arith.constant 0 : index
    %38 = vector.load %arg3[%c0_14, %c0_15] : memref<16x16xf32, #tpu.memory_space<vmem>>, vector<16x16xf32>
    %c0_16 = arith.constant 0 : index
    %c0_17 = arith.constant 0 : index
    %c0_18 = arith.constant 0 : index
    %39 = vector.load %arg6[%c0_16, %c0_17, %c0_18] : memref<1x32x32xbf16, #tpu.memory_space<vmem>>, vector<1x32x32xbf16>
    %40 = vector.shape_cast %39 : vector<1x32x32xbf16> to vector<32x32xbf16>
    %41 = vector.extract_strided_slice %36 {offsets = [0, 0], sizes = [16, 16], strides = [1, 1]} : vector<16x64xf32> to vector<16x16xf32>
    %42 = vector.extract_strided_slice %36 {offsets = [0, 32], sizes = [16, 16], strides = [1, 1]} : vector<16x64xf32> to vector<16x16xf32>
    %43 = vector.extract_strided_slice %37 {offsets = [0, 0], sizes = [16, 16], strides = [1, 1]} : vector<16x32xf32> to vector<16x16xf32>
    %44 = arith.truncf %41 : vector<16x16xf32> to vector<16x16xbf16>
    %45 = arith.truncf %42 : vector<16x16xf32> to vector<16x16xbf16>
    %cst_19 = arith.constant dense<0.000000e+00> : vector<16x16xf32>
    %46 = tpu.matmul %44, %45, %cst_19 {dimension_numbers = #tpu.dot_dimension_numbers<[1], [1], [0], [0], [0, 0, 1, 0], [], []>} : vector<16x16xbf16>, vector<16x16xbf16>, vector<16x16xf32> -> vector<16x16xf32>
    %47 = arith.addf %46, %38 : vector<16x16xf32>
    %cst_20 = arith.constant dense<0xFF800000> : vector<16xf32>
    %48 = vector.multi_reduction <maximumf>, %47, %cst_20 [1] : vector<16x16xf32> to vector<16xf32>
    %49 = vector.shape_cast %48 : vector<16xf32> to vector<16x1xf32>
    %50 = vector.broadcast %49 : vector<16x1xf32> to vector<16x16xf32>
    %51 = arith.subf %47, %50 : vector<16x16xf32>
    %52 = math.exp %51 : vector<16x16xf32>
    %cst_21 = arith.constant dense<0.000000e+00> : vector<16xf32>
    %53 = vector.multi_reduction <add>, %52, %cst_21 [1] : vector<16x16xf32> to vector<16xf32>
    %54 = vector.shape_cast %53 : vector<16xf32> to vector<16x1xf32>
    %55 = tpu.reciprocal %54 {approx = true} : vector<16x1xf32> -> vector<16x1xf32>
    %56 = vector.broadcast %55 : vector<16x1xf32> to vector<16x16xf32>
    %57 = arith.mulf %52, %56 : vector<16x16xf32>
    %58 = arith.truncf %57 : vector<16x16xf32> to vector<16x16xbf16>
    %59 = arith.truncf %43 : vector<16x16xf32> to vector<16x16xbf16>
    %cst_22 = arith.constant dense<0.000000e+00> : vector<16x16xf32>
    %60 = tpu.matmul %58, %59, %cst_22 {dimension_numbers = #tpu.dot_dimension_numbers<[1], [0], [0], [1], [0, 0, 1, 1], [], []>} : vector<16x16xbf16>, vector<16x16xbf16>, vector<16x16xf32> -> vector<16x16xf32>
    %61 = arith.truncf %60 : vector<16x16xf32> to vector<16x16xbf16>
    %62 = vector.extract_strided_slice %40 {offsets = [0, 0], sizes = [16, 32], strides = [1, 1]} : vector<32x32xbf16> to vector<16x32xbf16>
    %cst_23 = arith.constant dense<0.000000e+00> : vector<16x32xf32>
    %63 = tpu.matmul %61, %62, %cst_23 {dimension_numbers = #tpu.dot_dimension_numbers<[1], [0], [0], [1], [0, 0, 1, 1], [], []>} : vector<16x16xbf16>, vector<16x32xbf16>, vector<16x32xf32> -> vector<16x32xf32>
    %64 = vector.extract_strided_slice %36 {offsets = [0, 16], sizes = [16, 16], strides = [1, 1]} : vector<16x64xf32> to vector<16x16xf32>
    %65 = vector.extract_strided_slice %36 {offsets = [0, 48], sizes = [16, 16], strides = [1, 1]} : vector<16x64xf32> to vector<16x16xf32>
    %66 = vector.extract_strided_slice %37 {offsets = [0, 16], sizes = [16, 16], strides = [1, 1]} : vector<16x32xf32> to vector<16x16xf32>
    %67 = arith.truncf %64 : vector<16x16xf32> to vector<16x16xbf16>
    %68 = arith.truncf %65 : vector<16x16xf32> to vector<16x16xbf16>
    %cst_24 = arith.constant dense<0.000000e+00> : vector<16x16xf32>
    %69 = tpu.matmul %67, %68, %cst_24 {dimension_numbers = #tpu.dot_dimension_numbers<[1], [1], [0], [0], [0, 0, 1, 0], [], []>} : vector<16x16xbf16>, vector<16x16xbf16>, vector<16x16xf32> -> vector<16x16xf32>
    %70 = arith.addf %69, %38 : vector<16x16xf32>
    %cst_25 = arith.constant dense<0xFF800000> : vector<16xf32>
    %71 = vector.multi_reduction <maximumf>, %70, %cst_25 [1] : vector<16x16xf32> to vector<16xf32>
    %72 = vector.shape_cast %71 : vector<16xf32> to vector<16x1xf32>
    %73 = vector.broadcast %72 : vector<16x1xf32> to vector<16x16xf32>
    %74 = arith.subf %70, %73 : vector<16x16xf32>
    %75 = math.exp %74 : vector<16x16xf32>
    %cst_26 = arith.constant dense<0.000000e+00> : vector<16xf32>
    %76 = vector.multi_reduction <add>, %75, %cst_26 [1] : vector<16x16xf32> to vector<16xf32>
    %77 = vector.shape_cast %76 : vector<16xf32> to vector<16x1xf32>
    %78 = tpu.reciprocal %77 {approx = true} : vector<16x1xf32> -> vector<16x1xf32>
    %79 = vector.broadcast %78 : vector<16x1xf32> to vector<16x16xf32>
    %80 = arith.mulf %75, %79 : vector<16x16xf32>
    %81 = arith.truncf %80 : vector<16x16xf32> to vector<16x16xbf16>
    %82 = arith.truncf %66 : vector<16x16xf32> to vector<16x16xbf16>
    %cst_27 = arith.constant dense<0.000000e+00> : vector<16x16xf32>
    %83 = tpu.matmul %81, %82, %cst_27 {dimension_numbers = #tpu.dot_dimension_numbers<[1], [0], [0], [1], [0, 0, 1, 1], [], []>} : vector<16x16xbf16>, vector<16x16xbf16>, vector<16x16xf32> -> vector<16x16xf32>
    %84 = arith.truncf %83 : vector<16x16xf32> to vector<16x16xbf16>
    %85 = vector.extract_strided_slice %40 {offsets = [16, 0], sizes = [16, 32], strides = [1, 1]} : vector<32x32xbf16> to vector<16x32xbf16>
    %cst_28 = arith.constant dense<0.000000e+00> : vector<16x32xf32>
    %86 = tpu.matmul %84, %85, %cst_28 {dimension_numbers = #tpu.dot_dimension_numbers<[1], [0], [0], [1], [0, 0, 1, 1], [], []>} : vector<16x16xbf16>, vector<16x32xbf16>, vector<16x32xf32> -> vector<16x32xf32>
    %87 = arith.addf %63, %86 : vector<16x32xf32>
    %88 = arith.addf %3, %87 : vector<16x32xf32>
    %89 = vector.broadcast %9 : vector<1x32xf32> to vector<16x32xf32>
    %90 = arith.addf %88, %89 : vector<16x32xf32>
    %91 = arith.mulf %90, %90 : vector<16x32xf32>
    %cst_29 = arith.constant dense<0.000000e+00> : vector<16xf32>
    %92 = vector.multi_reduction <add>, %91, %cst_29 [1] : vector<16x32xf32> to vector<16xf32>
    %93 = vector.shape_cast %92 : vector<16xf32> to vector<16x1xf32>
    %cst_30 = arith.constant 3.200000e+01 : f32
    %94 = vector.broadcast %cst_30 : f32 to vector<16x1xf32>
    %95 = arith.divf %93, %94 : vector<16x1xf32>
    %cst_31 = arith.constant 9.99999997E-7 : f32
    %96 = vector.broadcast %cst_31 : f32 to vector<16x1xf32>
    %97 = arith.addf %95, %96 : vector<16x1xf32>
    %98 = math.rsqrt %97 : vector<16x1xf32>
    %99 = vector.broadcast %98 : vector<16x1xf32> to vector<16x32xf32>
    %100 = arith.mulf %90, %99 : vector<16x32xf32>
    %101 = vector.broadcast %8 : vector<1x32xf32> to vector<16x32xf32>
    %102 = arith.mulf %100, %101 : vector<16x32xf32>
    %103 = arith.truncf %102 : vector<16x32xf32> to vector<16x32xbf16>
    %c0_32 = arith.constant 0 : index
    %c0_33 = arith.constant 0 : index
    %c0_34 = arith.constant 0 : index
    %104 = vector.load %arg7[%c0_32, %c0_33, %c0_34] : memref<1x32x64xbf16, #tpu.memory_space<vmem>>, vector<1x32x64xbf16>
    %105 = vector.shape_cast %104 : vector<1x32x64xbf16> to vector<32x64xbf16>
    %cst_35 = arith.constant dense<0.000000e+00> : vector<16x64xf32>
    %106 = tpu.matmul %103, %105, %cst_35 {dimension_numbers = #tpu.dot_dimension_numbers<[1], [0], [0], [1], [0, 0, 1, 1], [], []>} : vector<16x32xbf16>, vector<32x64xbf16>, vector<16x64xf32> -> vector<16x64xf32>
    %107 = vector.broadcast %10 : vector<1x64xf32> to vector<16x64xf32>
    %108 = arith.addf %106, %107 : vector<16x64xf32>
    %109 = vector.extract_strided_slice %108 {offsets = [0, 0], sizes = [16, 32], strides = [1, 1]} : vector<16x64xf32> to vector<16x32xf32>
    %110 = vector.extract_strided_slice %108 {offsets = [0, 32], sizes = [16, 32], strides = [1, 1]} : vector<16x64xf32> to vector<16x32xf32>
    %cst_36 = arith.constant 5.000000e-01 : f32
    %111 = vector.broadcast %cst_36 : f32 to vector<16x32xf32>
    %112 = arith.mulf %111, %109 : vector<16x32xf32>
    %cst_37 = arith.constant 4.471500e-02 : f32
    %113 = vector.broadcast %cst_37 : f32 to vector<16x32xf32>
    %114 = arith.mulf %113, %109 : vector<16x32xf32>
    %115 = arith.mulf %114, %109 : vector<16x32xf32>
    %116 = arith.mulf %115, %109 : vector<16x32xf32>
    %117 = arith.addf %109, %116 : vector<16x32xf32>
    %cst_38 = arith.constant 0.797884583 : f32
    %118 = vector.broadcast %cst_38 : f32 to vector<16x32xf32>
    %119 = arith.mulf %118, %117 : vector<16x32xf32>
    %120 = math.tanh %119 : vector<16x32xf32>
    %cst_39 = arith.constant 1.000000e+00 : f32
    %121 = vector.broadcast %cst_39 : f32 to vector<16x32xf32>
    %122 = arith.addf %121, %120 : vector<16x32xf32>
    %123 = arith.mulf %112, %122 : vector<16x32xf32>
    %124 = arith.mulf %123, %110 : vector<16x32xf32>
    %125 = arith.truncf %124 : vector<16x32xf32> to vector<16x32xbf16>
    %c0_40 = arith.constant 0 : index
    %c0_41 = arith.constant 0 : index
    %c0_42 = arith.constant 0 : index
    %126 = vector.load %arg8[%c0_40, %c0_41, %c0_42] : memref<1x32x32xbf16, #tpu.memory_space<vmem>>, vector<1x32x32xbf16>
    %127 = vector.shape_cast %126 : vector<1x32x32xbf16> to vector<32x32xbf16>
    %cst_43 = arith.constant dense<0.000000e+00> : vector<16x32xf32>
    %128 = tpu.matmul %125, %127, %cst_43 {dimension_numbers = #tpu.dot_dimension_numbers<[1], [0], [0], [1], [0, 0, 1, 1], [], []>} : vector<16x32xbf16>, vector<32x32xbf16>, vector<16x32xf32> -> vector<16x32xf32>
    %129 = vector.broadcast %11 : vector<1x32xf32> to vector<16x32xf32>
    %130 = arith.addf %128, %129 : vector<16x32xf32>
    %131 = arith.addf %102, %130 : vector<16x32xf32>
    %c1_i32 = arith.constant 1 : i32
    %132 = arith.cmpi slt, %arg0, %c1_i32 : i32
    %133 = arith.extui %132 : i1 to i32
    %c0_i32_44 = arith.constant 0 : i32
    %134 = arith.cmpi ne, %133, %c0_i32_44 : i32
    scf.if %134 {
      %c0_47 = arith.constant 0 : index
      %c0_48 = arith.constant 0 : index
      %138 = vector.load %arg10[%c0_47, %c0_48] : memref<16x32xf32, #tpu.memory_space<vmem>>, vector<16x32xf32>
      tpu.vector_store %arg10[%c0_47, %c0_48], %131 {strides = array<i32>} : memref<16x32xf32, #tpu.memory_space<vmem>>, vector<16x32xf32>,
    } else {
    }
    %c1_i32_45 = arith.constant 1 : i32
    %135 = arith.cmpi eq, %arg0, %c1_i32_45 : i32
    %136 = arith.extui %135 : i1 to i32
    %c0_i32_46 = arith.constant 0 : i32
    %137 = arith.cmpi ne, %136, %c0_i32_46 : i32
    scf.if %137 {
      %138 = arith.mulf %131, %131 : vector<16x32xf32>
      %cst_47 = arith.constant dense<0.000000e+00> : vector<16xf32>
      %139 = vector.multi_reduction <add>, %138, %cst_47 [1] : vector<16x32xf32> to vector<16xf32>
      %140 = vector.shape_cast %139 : vector<16xf32> to vector<16x1xf32>
      %cst_48 = arith.constant 3.200000e+01 : f32
      %141 = vector.broadcast %cst_48 : f32 to vector<16x1xf32>
      %142 = arith.divf %140, %141 : vector<16x1xf32>
      %cst_49 = arith.constant 9.99999997E-7 : f32
      %143 = vector.broadcast %cst_49 : f32 to vector<16x1xf32>
      %144 = arith.addf %142, %143 : vector<16x1xf32>
      %145 = math.rsqrt %144 : vector<16x1xf32>
      %146 = vector.broadcast %145 : vector<16x1xf32> to vector<16x32xf32>
      %147 = arith.mulf %131, %146 : vector<16x32xf32>
      %c0_50 = arith.constant 0 : index
      %c0_51 = arith.constant 0 : index
      %148 = vector.load %arg4[%c0_50, %c0_51] : memref<1x32xf32, #tpu.memory_space<vmem>>, vector<1x32xf32>
      %149 = vector.broadcast %148 : vector<1x32xf32> to vector<16x32xf32>
      %150 = arith.mulf %147, %149 : vector<16x32xf32>
      %c0_52 = arith.constant 0 : index
      %c0_53 = arith.constant 0 : index
      %151 = vector.load %arg10[%c0_52, %c0_53] : memref<16x32xf32, #tpu.memory_space<vmem>>, vector<16x32xf32>
      tpu.vector_store %arg10[%c0_52, %c0_53], %150 {strides = array<i32>} : memref<16x32xf32, #tpu.memory_space<vmem>>, vector<16x32xf32>,
    } else {
    }
    return
  }
  func.func @transform_0(%arg0: i32) -> (i32, i32) {
    %c0_i32 = arith.constant 0 : i32
    %c0_i32_0 = arith.constant 0 : i32
    %c0_i32_1 = arith.constant 0 : i32
    return %c0_i32, %c0_i32_0 : i32, i32
  }
  func.func @transform_1(%arg0: i32) -> (i32, i32) {
    %c0_i32 = arith.constant 0 : i32
    %c0_i32_0 = arith.constant 0 : i32
    %c0_i32_1 = arith.constant 0 : i32
    return %c0_i32, %c0_i32_0 : i32, i32
  }
  func.func @transform_2(%arg0: i32) -> (i32, i32) {
    %c0_i32 = arith.constant 0 : i32
    %c0_i32_0 = arith.constant 0 : i32
    %c0_i32_1 = arith.constant 0 : i32
    return %c0_i32, %c0_i32_0 : i32, i32
  }
  func.func @transform_3(%arg0: i32) -> (i32, i32) {
    %c0_i32 = arith.constant 0 : i32
    %c0_i32_0 = arith.constant 0 : i32
    %c0_i32_1 = arith.constant 0 : i32
    return %c0_i32, %c0_i32_0 : i32, i32
  }
  func.func @transform_4(%arg0: i32) -> (i32, i32, i32) {
    %c0_i32 = arith.constant 0 : i32
    %c0_i32_0 = arith.constant 0 : i32
    %c0_i32_1 = arith.constant 0 : i32
    return %arg0, %c0_i32, %c0_i32_0 : i32, i32, i32
  }
  func.func @transform_5(%arg0: i32) -> (i32, i32, i32) {
    %c0_i32 = arith.constant 0 : i32
    %c0_i32_0 = arith.constant 0 : i32
    %c0_i32_1 = arith.constant 0 : i32
    return %arg0, %c0_i32, %c0_i32_0 : i32, i32, i32
  }
  func.func @transform_6(%arg0: i32) -> (i32, i32, i32) {
    %c0_i32 = arith.constant 0 : i32
    %c0_i32_0 = arith.constant 0 : i32
    %c0_i32_1 = arith.constant 0 : i32
    return %arg0, %c0_i32, %c0_i32_0 : i32, i32, i32
  }
  func.func @transform_7(%arg0: i32) -> (i32, i32, i32) {
    %c0_i32 = arith.constant 0 : i32
    %c0_i32_0 = arith.constant 0 : i32
    %c0_i32_1 = arith.constant 0 : i32
    return %arg0, %c0_i32, %c0_i32_0 : i32, i32, i32
  }
  func.func @transform_8(%arg0: i32) -> (i32, i32, i32) {
    %c0_i32 = arith.constant 0 : i32
    %c0_i32_0 = arith.constant 0 : i32
    %c0_i32_1 = arith.constant 0 : i32
    return %arg0, %c0_i32, %c0_i32_0 : i32, i32, i32
  }
  func.func @transform_9(%arg0: i32) -> (i32, i32) {
    %c0_i32 = arith.constant 0 : i32
    %c0_i32_0 = arith.constant 0 : i32
    %c0_i32_1 = arith.constant 0 : i32
    return %c0_i32, %c0_i32_0 : i32, i32
  }
}

</mosaic_0001>

<bundles_post_ra>
// kernel: tpu_custom_call.1
= control target key start
LH: loop header
LB: loop body
LE: loop exit
PB: predicated region body
PF: predicated region fallthrough
CT: control target
= control target key end

     0   :  { %s2554_s0 = inlined_call_operand.hbm [shape: f32[16,32], index: 0, kind: input, shape index: {}]   ;;  %s2555_s1 = inlined_call_operand.hbm [shape: f32[16,128], index: 1, kind: input, shape index: {}]   ;;  %s2556_s2 = inlined_call_operand.hbm [shape: f32[16,16], index: 2, kind: input, shape index: {}]   ;;  %s2557_s3 = inlined_call_operand.vmem [shape: f32[1,32], index: 3, kind: input, shape index: {}]   ;;  %s2558_s4 = inlined_call_operand.hbm [shape: bf16[2,32,160], index: 4, kind: input, shape index: {}]   ;;  %s2559_s5 = inlined_call_operand.hbm [shape: bf16[2,32,32], index: 5, kind: input, shape index: {}]   ;;  %s2560_s6 = inlined_call_operand.hbm [shape: bf16[2,32,64], index: 6, kind: input, shape index: {}]   ;;  %s2561_s7 = inlined_call_operand.hbm [shape: bf16[2,32,32], index: 7, kind: input, shape index: {}]   ;;  %s2562_s8 = inlined_call_operand.hbm [shape: f32[2,8,160], index: 8, kind: input, shape index: {}]   ;;  %s2563_s9 = inlined_call_operand.hbm [shape: f32[16,32], index: 9, kind: output, shape index: {}]  }
   0x1   :  { %2577 = sst [smem:[#allocation26_spill]] %s2555_s1 }
   0x2   :  { %2578 = sst [smem:[#allocation27_spill]] %s2557_s3 }
   0x3   :  { %2579 = sst [smem:[#allocation28_spill]] %s2558_s4 }
   0x4   :  { %2580 = sst [smem:[#allocation29_spill]] %s2563_s9 }
   0x5   :  { %14 = vsyncpa [#allocation3], 0 }
   0x6   :  { %15 = vsyncpa [#allocation6], 0 }
   0x7   :  { %16 = vsyncpa [#allocation9], 0 }
   0x8   :  { %18 = vsyncpa [#allocation9 + $0x1], 0 }
   0x9   :  { %19 = vsyncpa [#allocation12], 0 }
   0xa   :  { %21 = vsyncpa [#allocation12 + $0x1], 0 }
   0xb   :  { %22 = vsyncpa [#allocation15], 0 }
   0xc   :  { %24 = vsyncpa [#allocation15 + $0x1], 0 }
   0xd   :  { %25 = vsyncpa [#allocation4], 0  ;;  %s2101_s30 = smov 0   ;;  %s2103_s10 = smov 0  }
   0xe   :  { %s2105_s11 = smov 0   ;;  %s2107_s12 = smov 0  }
   0xf LB: > { %2581 = sst [smem:[#allocation23_spill]] %s2022_s11  ;;  %s2120_s13 = sadd.s32 4294967295, %s2026_s12   ;;  %s2026_s12 = sphi %s2107_s12, %s2608_s12   ;;  %s2022_s11 = sphi %s2105_s11, %s2610_s11   ;;  %s2018_s10 = sphi %s2103_s10, %s2612_s10   ;;  %s2014_s30 = sphi %s2101_s30, %s2611_s30  }
  0x10   : > { %s2123_s14 = sadd.s32 1, %s2026_s12   ;;  %s122_s16 = sadd.s32 1, %s2022_s11 }
  0x11   : > { %2582 = sst [smem:[#allocation24_spill]] %s2123_s14  ;;  %s119_s15 = ssub.s32 %s2026_s12, %s2123_s14 }
  0x12   : > { %p120_p0 = scmp.eq.s32.totalorder %s119_s15, 0  ;;  %p129_p1 = scmp.ne.s32.totalorder %s2022_s11, %s2018_s10 }
  0x13   : > { %p130_p2 = scmp.eq.s32.totalorder %s2026_s12, 0  ;;  %p135_p3 = scmp.ne.s32.totalorder %s2018_s10, %s2014_s30 }
  0x14   : > { %s2133_s17 = scalar_select %p120_p0, %s2022_s11, %s122_s16  }
  0x15   : > { %p2135_p4 = por %p130_p2, %p129_p1  ;;  %p2571_p5 = scmp.eq.s32.totalorder %s2120_s13, 0 }
  0x16   : > { %2583 = sst [smem:[#allocation25_spill]] %s2133_s17  ;;  %p1444_p6 = scmp.ge.s32.totalorder %s2026_s12, 1 }
  0x17   : > { %p271_p7 = scmp.lt.s32.totalorder %s2026_s12, 3  ;;  %p2144_p8 = por %p2571_p5, %p135_p3 }
  0x18   : > { %s2028_s21 = smov [#allocation5]   ;;  %p1630_p13 = scmp.lt.s32.totalorder %s2026_s12, 2 }
  0x19   : > { %s2585_s19 = scalar_select %p2144_p8, 1, 0 }
  0x1a   : > { %p2149_p10 = pnand %p1444_p6, %p271_p7  ;;  %s296_s22 = sshll.u32 %s2028_s21, 4  ;;  %s297_s22 = int_to_ptr.vmem [resolvable:$true] %s296_s22 }
  0x1b   : > { %s2164_s25 = sand.u32 1, %s2022_s11   ;;  %s1741_s26 = scalar_lea.vmem %s297_s22, 256 }
  0x1c   : > { %s2586_s20 = scalar_select %p2149_p10, 1, 0 }
  0x1d   : > { %p1601_p11 = pneg %p2149_p10  ;;  %p1742_p1 = scmp.ne.s32.totalorder %s297_s22, %s1741_s26 }
  0x1e   : > { %p1749_p6 = scmp.lt.s32.totalorder %s297_s22, %s297_s22  ;;  %p1750_p7 = scmp.lt.s32.totalorder %s1741_s26, %s1741_s26 }
  0x1f   : > { %p2157_p12 = pnand %p1601_p11, %p2571_p5 }
  0x20   : > { %p1751_p11 = por %p1750_p7, %p1749_p6 }
  0x21   : > { %s2587_s23 = scalar_select %p2157_p12, 1, 0 }
  0x22   : > { %p2572_p0 = pneg %p2157_p12 }
  0x24   : > { %p1744_p2 = pnand %p1742_p1, %p2572_p0 }
  0x26   : > { %p1745_p3 = pneg %p1744_p2 }
  0x28   : > { %p1752_p9 = pnand %p1751_p11, %p1745_p3 }
  0x2a   : > { %1755 = shalt.err (!%p1752_p9)
}
  0x2b   : > { %s2567_s27 = smov 128   ;;  %s2569_s28 = smov 8  }
  0x2c   : > { %s2588_s1 = sld [smem:[#allocation26_spill]]  ;;  %s1449_s15 = sshll.u32 %s2164_s25, 5 }
  0x2d   : > { %s1500_s16 = sshll.u32 %s2026_s12, 9  ;;  %s2589_s4 = sld [smem:[#allocation28_spill]] }
  0x2e   : > { %s330_s17 = scalar_lea.vmem [#allocation8], %s1449_s15  ;;  %p2190_p9 = pnand %p1630_p13, %p2135_p4 }
  0x2f   : > { %s337_s11 = sshll.u32 %s330_s17, 4  ;;  %s2200_s29 = sshll.u32 %s2026_s12, 8  ;;  %s2194_s11 = int_to_ptr.vmem [resolvable:$true] %s337_s11 }
  0x30   : > { %s2591_s30 = sand.u32 1, %s2026_s12   ;;  %p2210_p2 = pneg %p2190_p9 }
  0x32   : > { %1607 = dma.hbm_to_vmem [thread:$0]  (!%p2157_p12), %s2588_s1, 256, %s297_s22, [#allocation6], %s2567_s27, %s2567_s27, %s2569_s28  }
  0x33   : > { %s2184_s24 = scalar_lea.hbm %s2589_s4, %s1500_s16  ;;  %s2197_s22 = sshll.u32 %s2164_s25, 4 }
  0x34   : > { %s2204_s16 = scalar_lea.sflag [#allocation9], %s2591_s30  ;;  %s1756_s21 = scalar_lea.hbm %s2184_s24, 512 }
  0x35   : > { %p1757_p1 = scmp.ne.s32.totalorder %s2184_s24, %s1756_s21  ;;  %s1761_s26 = scalar_lea.hbm %s2589_s4, 1024 }
  0x36   : > { %p1762_p3 = scmp.lt.s32.totalorder %s2184_s24, %s2589_s4  ;;  %p1763_p6 = scmp.lt.s32.totalorder %s1761_s26, %s1756_s21 }
  0x37   : > { %p1759_p4 = pnand %p2210_p2, %p1757_p1 }
  0x38   : > { %p1764_p7 = por %p1763_p6, %p1762_p3 }
  0x39   : > { %p1760_p13 = pneg %p1759_p4 }
  0x3b   : > { %p1765_p11 = pnand %p1764_p7, %p1760_p13 }
  0x3d   : > { %1768 = shalt.err (!%p1765_p11)
}
  0x3e   : > { %s1769_s30 = scalar_lea.vmem %s2194_s11, 512  ;;  %s2031_s1 = smov [#allocation8]  }
  0x3f   : > { %p1770_p5 = scmp.ne.s32.totalorder %s2194_s11, %s1769_s30  ;;  %s1774_s18 = sshll.u32 %s2031_s1, 4  ;;  %s1775_s18 = int_to_ptr.vmem [resolvable:$false] %s1774_s18 }
  0x40   : > { %s1776_s15 = scalar_lea.vmem %s1775_s18, 1024  ;;  %p1777_p0 = scmp.lt.s32.totalorder %s2194_s11, %s1775_s18 }
  0x41   : > { %p1772_p1 = pnand %p1770_p5, %p2210_p2  ;;  %p1778_p8 = scmp.lt.s32.totalorder %s1776_s15, %s1769_s30 }
  0x43   : > { %p1773_p4 = pneg %p1772_p1  ;;  %p1779_p10 = por %p1778_p8, %p1777_p0 }
  0x45   : > { %p1780_p12 = pnand %p1779_p10, %p1773_p4 }
  0x47   : > { %1783 = shalt.err (!%p1780_p12)
}
  0x48   : > { %s2593_s27 = smov 8   ;;  %s2594_s28 = smov 128  }
  0x49   : > { %1614 = dma.hbm_to_vmem [thread:$0]  (!%p2190_p9), %s2184_s24, 512, %s2194_s11, %s2204_s16, %s2594_s28, %s2594_s28, %s2593_s27  }
  0x4a   : > { %s2240_s26 = scalar_lea.hbm %s2560_s6, %s2200_s29  ;;  %s372_s30 = scalar_lea.vmem [#allocation11], %s2197_s22 }
  0x4b   : > { %s379_s18 = sshll.u32 %s372_s30, 4  ;;  %s2595_s15 = sand.u32 1, %s2026_s12   ;;  %s2243_s18 = int_to_ptr.vmem [resolvable:$true] %s379_s18 }
  0x4c   : > { %s2247_s4 = scalar_lea.sflag [#allocation12], %s2595_s15  ;;  %s1784_s9 = scalar_lea.hbm %s2240_s26, 256 }
  0x4d   : > { %p1785_p5 = scmp.ne.s32.totalorder %s2240_s26, %s1784_s9  ;;  %s1789_s1 = scalar_lea.hbm %s2560_s6, 512 }
  0x4e   : > { %p1790_p12 = scmp.lt.s32.totalorder %s2240_s26, %s2560_s6  ;;  %p1791_p0 = scmp.lt.s32.totalorder %s1789_s1, %s1784_s9 }
  0x4f   : > { %p1787_p8 = pnand %p1785_p5, %p2210_p2 }
  0x50   : > { %p1792_p13 = por %p1791_p0, %p1790_p12 }
  0x51   : > { %p1788_p10 = pneg %p1787_p8 }
  0x53   : > { %p1793_p3 = pnand %p1792_p13, %p1788_p10 }
  0x55   : > { %1796 = shalt.err (!%p1793_p3)
}
  0x56   : > { %s1797_s12 = scalar_lea.vmem %s2243_s18, 256  ;;  %s2032_s30 = smov [#allocation11]  }
  0x57   : > { %p1798_p6 = scmp.ne.s32.totalorder %s2243_s18, %s1797_s12  ;;  %s1802_s15 = sshll.u32 %s2032_s30, 4  ;;  %s1803_s15 = int_to_ptr.vmem [resolvable:$false] %s1802_s15 }
  0x58   : > { %s1804_s11 = scalar_lea.vmem %s1803_s15, 512  ;;  %p1805_p1 = scmp.lt.s32.totalorder %s2243_s18, %s1803_s15 }
  0x59   : > { %p1800_p7 = pnand %p1798_p6, %p2210_p2  ;;  %p1806_p4 = scmp.lt.s32.totalorder %s1804_s11, %s1797_s12 }
  0x5b   : > { %p1801_p11 = pneg %p1800_p7  ;;  %p1807_p5 = por %p1806_p4, %p1805_p1 }
  0x5d   : > { %p1808_p8 = pnand %p1807_p5, %p1801_p11 }
  0x5f   : > { %1811 = shalt.err (!%p1808_p8)
}
  0x60   : > { %s2033_s3 = smov 64   ;;  %s2034_s9 = smov 4  }
  0x61   : > { %1620 = dma.hbm_to_vmem [thread:$0]  (!%p2190_p9), %s2240_s26, 256, %s2243_s18, %s2247_s4, %s2033_s3, %s2033_s3, %s2034_s9  }
  0x62   : > { %s2035_s24 = smov [#allocation2]   ;;  %s2036_s21 = smov [#allocation7]  }
  0x63   : > { %s283_s1 = sshll.u32 %s2035_s24, 4  ;;  %s309_s12 = sshll.u32 %s2036_s21, 4  ;;  %s284_s1 = int_to_ptr.vmem [resolvable:$true] %s283_s1  ;;  %s310_s12 = int_to_ptr.vmem [resolvable:$true] %s309_s12 }
  0x64   : > { %s1823_s30 = scalar_lea.vmem %s284_s1, 256  ;;  %p2596_p12 = scmp.ne.s32.totalorder %s2587_s23, 0 }
  0x65   : > { %p1824_p10 = scmp.ne.s32.totalorder %s284_s1, %s1823_s30  ;;  %p1831_p6 = scmp.lt.s32.totalorder %s284_s1, %s284_s1 }
  0x66   : > { %p2597_p0 = pneg %p2596_p12  ;;  %p1832_p7 = scmp.lt.s32.totalorder %s1823_s30, %s1823_s30 }
  0x68   : > { %p1826_p13 = pnand %p1824_p10, %p2597_p0  ;;  %p1833_p11 = por %p1832_p7, %p1831_p6 }
  0x6a   : > { %p1827_p3 = pneg %p1826_p13 }
  0x6c   : > { %p1834_p1 = pnand %p1833_p11, %p1827_p3 }
  0x6e   : > { %1837 = shalt.err (!%p1834_p1)
}
  0x6f   : > { %1604 = dma.hbm_to_vmem [thread:$0]  (!%p2596_p12), %s2554_s0, 256, %s284_s1, [#allocation3], %s2594_s28, %s2594_s28, %s2593_s27  }
  0x70   : > { %s1849_s15 = scalar_lea.vmem %s310_s12, 256  ;;  %p2598_p5 = pmov %p2597_p0 }
  0x71   : > { %p1850_p4 = scmp.ne.s32.totalorder %s310_s12, %s1849_s15  ;;  %p1857_p0 = scmp.lt.s32.totalorder %s310_s12, %s310_s12 }
  0x72   : > { %p1858_p13 = scmp.lt.s32.totalorder %s1849_s15, %s1849_s15 }
  0x73   : > { %p1852_p8 = pnand %p1850_p4, %p2598_p5 }
  0x74   : > { %p1859_p3 = por %p1858_p13, %p1857_p0 }
  0x75   : > { %p1853_p10 = pneg %p1852_p8 }
  0x77   : > { %p1860_p6 = pnand %p1859_p3, %p1853_p10 }
  0x79   : > { %1863 = shalt.err (!%p1860_p6)
}
  0x7a   : > { %1610 = dma.hbm_to_vmem [thread:$0]  (!%p2596_p12), %s2556_s2, 256, %s310_s12, [#allocation6], %s2594_s28, %s2594_s28, %s2593_s27  }
  0x7b   : > { %s2299_s30 = scalar_lea.hbm %s2559_s5, %s2200_s29  ;;  %s351_s26 = scalar_lea.vmem [#allocation10], %s2197_s22 }
  0x7c   : > { %s358_s23 = sshll.u32 %s351_s26, 4  ;;  %s1864_s18 = scalar_lea.hbm %s2299_s30, 256  ;;  %s359_s23 = int_to_ptr.vmem [resolvable:$true] %s358_s23 }
  0x7d   : > { %p1865_p7 = scmp.ne.s32.totalorder %s2299_s30, %s1864_s18  ;;  %s1869_s27 = scalar_lea.hbm %s2559_s5, 512 }
  0x7e   : > { %p1870_p12 = scmp.lt.s32.totalorder %s2299_s30, %s2559_s5  ;;  %p1871_p4 = scmp.lt.s32.totalorder %s1869_s27, %s1864_s18 }
  0x7f   : > { %p1867_p11 = pnand %p1865_p7, %p2210_p2 }
  0x80   : > { %p1872_p5 = por %p1871_p4, %p1870_p12 }
  0x81   : > { %p1868_p1 = pneg %p1867_p11 }
  0x83   : > { %p1873_p8 = pnand %p1872_p5, %p1868_p1 }
  0x85   : > { %1876 = shalt.err (!%p1873_p8)
}
  0x86   : > { %s1877_s24 = scalar_lea.vmem %s359_s23, 256  ;;  %s2037_s1 = smov [#allocation10]  }
  0x87   : > { %p1878_p10 = scmp.ne.s32.totalorder %s359_s23, %s1877_s24  ;;  %s1882_s21 = sshll.u32 %s2037_s1, 4  ;;  %s1883_s21 = int_to_ptr.vmem [resolvable:$false] %s1882_s21 }
  0x88   : > { %s1884_s26 = scalar_lea.vmem %s1883_s21, 512  ;;  %p1885_p3 = scmp.lt.s32.totalorder %s359_s23, %s1883_s21 }
  0x89   : > { %p1880_p0 = pnand %p1878_p10, %p2210_p2  ;;  %p1886_p6 = scmp.lt.s32.totalorder %s1884_s26, %s1877_s24 }
  0x8b   : > { %p1881_p13 = pneg %p1880_p0  ;;  %p1887_p7 = por %p1886_p6, %p1885_p3 }
  0x8d   : > { %p1888_p11 = pnand %p1887_p7, %p1881_p13 }
  0x8f   : > { %1891 = shalt.err (!%p1888_p11)
}
  0x90   : > { %1617 = dma.hbm_to_vmem [thread:$0]  (!%p2190_p9), %s2299_s30, 256, %s359_s23, %s2204_s16, %s2033_s3, %s2033_s3, %s2034_s9  }
  0x91   : > { %s2326_s11 = scalar_lea.hbm %s2561_s7, %s2200_s29  ;;  %s393_s27 = scalar_lea.vmem [#allocation13], %s2197_s22 }
  0x92   : > { %s400_s28 = sshll.u32 %s393_s27, 4  ;;  %s1892_s12 = scalar_lea.hbm %s2326_s11, 256  ;;  %s401_s28 = int_to_ptr.vmem [resolvable:$true] %s400_s28 }
  0x93   : > { %p1893_p1 = scmp.ne.s32.totalorder %s2326_s11, %s1892_s12  ;;  %s1897_s16 = scalar_lea.hbm %s2561_s7, 512 }
  0x94   : > { %p1898_p5 = scmp.lt.s32.totalorder %s2326_s11, %s2561_s7  ;;  %p1899_p8 = scmp.lt.s32.totalorder %s1897_s16, %s1892_s12 }
  0x95   : > { %p1895_p12 = pnand %p1893_p1, %p2210_p2 }
  0x96   : > { %p1900_p10 = por %p1899_p8, %p1898_p5 }
  0x97   : > { %p1896_p4 = pneg %p1895_p12 }
  0x99   : > { %p1901_p0 = pnand %p1900_p10, %p1896_p4 }
  0x9b   : > { %1904 = shalt.err (!%p1901_p0)
}
  0x9c   : > { %s1905_s21 = scalar_lea.vmem %s401_s28, 256  ;;  %s2038_s26 = smov [#allocation13]  }
  0x9d   : > { %p1906_p13 = scmp.ne.s32.totalorder %s401_s28, %s1905_s21  ;;  %s1910_s18 = sshll.u32 %s2038_s26, 4  ;;  %s1911_s18 = int_to_ptr.vmem [resolvable:$false] %s1910_s18 }
  0x9e   : > { %s1912_s15 = scalar_lea.vmem %s1911_s18, 512  ;;  %p1913_p7 = scmp.lt.s32.totalorder %s401_s28, %s1911_s18 }
  0x9f   : > { %p1908_p3 = pnand %p1906_p13, %p2210_p2  ;;  %p1914_p11 = scmp.lt.s32.totalorder %s1912_s15, %s1905_s21 }
  0xa1   : > { %p1909_p6 = pneg %p1908_p3  ;;  %p1915_p1 = por %p1914_p11, %p1913_p7 }
  0xa3   : > { %p1916_p12 = pnand %p1915_p1, %p1909_p6 }
  0xa5   : > { %1919 = shalt.err (!%p1916_p12)
}
  0xa6   : > { %1623 = dma.hbm_to_vmem [thread:$0]  (!%p2190_p9), %s2326_s11, 256, %s401_s28, %s2247_s4, %s2033_s3, %s2033_s3, %s2034_s9  }
  0xa7   : > { %s2353_s24 = scalar_lea.hbm %s2562_s8, %s2200_s29  ;;  %s414_s1 = scalar_lea.vmem [#allocation14], %s2197_s22 }
  0xa8   : > { %s422_s16 = sshll.u32 %s414_s1, 4  ;;  %s411_s30 = scalar_lea.sflag [#allocation15], %s2164_s25  ;;  %s423_s16 = int_to_ptr.vmem [resolvable:$true] %s422_s16 }
  0xa9   : > { %s1920_s23 = scalar_lea.hbm %s2353_s24, 256  ;;  %s1925_s4 = scalar_lea.hbm %s2562_s8, 512 }
  0xaa   : > { %p1921_p4 = scmp.ne.s32.totalorder %s2353_s24, %s1920_s23  ;;  %p1926_p10 = scmp.lt.s32.totalorder %s2353_s24, %s2562_s8 }
  0xab   : > { %p1927_p0 = scmp.lt.s32.totalorder %s1925_s4, %s1920_s23 }
  0xac   : > { %p1923_p5 = pnand %p1921_p4, %p2210_p2 }
  0xad   : > { %p1928_p13 = por %p1927_p0, %p1926_p10 }
  0xae   : > { %p1924_p8 = pneg %p1923_p5 }
  0xb0   : > { %p1929_p3 = pnand %p1928_p13, %p1924_p8 }
  0xb2   : > { %1932 = shalt.err (!%p1929_p3)
}
  0xb3   : > { %s1933_s22 = scalar_lea.vmem %s423_s16, 256  ;;  %s2039_s25 = smov [#allocation14]  }
  0xb4   : > { %p1934_p6 = scmp.ne.s32.totalorder %s423_s16, %s1933_s22  ;;  %s1938_s29 = sshll.u32 %s2039_s25, 4  ;;  %s1939_s29 = int_to_ptr.vmem [resolvable:$false] %s1938_s29 }
  0xb5   : > { %s1940_s11 = scalar_lea.vmem %s1939_s29, 512  ;;  %p1941_p1 = scmp.lt.s32.totalorder %s423_s16, %s1939_s29 }
  0xb6   : > { %p1936_p7 = pnand %p1934_p6, %p2210_p2  ;;  %p1942_p12 = scmp.lt.s32.totalorder %s1940_s11, %s1933_s22 }
  0xb8   : > { %p1937_p11 = pneg %p1936_p7  ;;  %p1943_p4 = por %p1942_p12, %p1941_p1 }
  0xba   : > { %p1944_p5 = pnand %p1943_p4, %p1937_p11 }
  0xbc   : > { %1947 = shalt.err (!%p1944_p5)
}
  0xbd   : > { %1626 = dma.hbm_to_vmem [thread:$0]  (!%p2190_p9), %s2353_s24, 256, %s423_s16, %s411_s30  }
  0xbe   : > { %p2599_p8 = scmp.ne.s32.totalorder %s2586_s20, 0 }
  0xbf   : > { %p2600_p10 = scmp.eq.s32.totalorder (!%p2599_p8), %s2120_s13, 0 }
  0xc0   : > { %431 = sbr.rel (%p2599_p8) target bundleno = 2768 (0xad0), region = 56 }
  0xc5   : > { %1989 = dma.done.wait (%p2600_p10), [#allocation3], 256   ;;  %p2601_p2 = pmov %p2600_p10 }
  0xc7   : > { %1991 = vsyncadd (%p2601_p2), [#allocation3], 4294967040  ;;  %p2602_p0 = pmov %p2601_p2 }
  0xc9   : > { %1993 = dma.done.wait (%p2602_p0), [#allocation6], 512   ;;  %p2603_p13 = pmov %p2602_p0 }
  0xca   : > { %s445_s14 = sand.u32 1, %s2120_s13   ;;  %s447_s17 = sand.u32 1, %s2018_s10  }
  0xcb   : > { %1995 = vsyncadd (%p2603_p13), [#allocation6], 4294966784  ;;  %s1468_s28 = sshll.u32 %s447_s17, 5  ;;  %s446_s20 = scalar_lea.sflag [#allocation9], %s445_s14 }
  0xcc   : > { %s2385_s18 = scalar_lea.vmem [#allocation8], %s1468_s28  ;;  %p2604_p9 = scmp.ne.s32.totalorder %s2585_s19, 0 }
  0xce   : > { %1997 = dma.done.wait (%p2604_p9), %s446_s20, 768  }
  0xcf   : > { %1999 = vsyncadd (%p2604_p9), %s446_s20, 4294966528  ;;  %s2391_s15 = sshll.u32 %s447_s17, 4  ;;  %s464_s12 = scalar_lea.sflag [#allocation12], %s445_s14 }
  0xd0   : > { %s458_s27 = scalar_lea.vmem [#allocation10], %s2391_s15  ;;  %s467_s24 = scalar_lea.vmem [#allocation11], %s2391_s15 }
  0xd1   : > { %2001 = dma.done.wait (%p2604_p9), %s464_s12, 512  }
  0xd2   : > { %2003 = vsyncadd (%p2604_p9), %s464_s12, 4294966784  ;;  %s476_s1 = scalar_lea.vmem [#allocation13], %s2391_s15  ;;  %s482_s16 = scalar_lea.sflag [#allocation15], %s447_s17 }
  0xd3   : > { %s485_s30 = scalar_lea.vmem [#allocation14], %s2391_s15 }
  0xd4   : > { %2005 = dma.done.wait (%p2604_p9), %s482_s16, 256  }
  0xd5   : > { %2007 = vsyncadd (%p2604_p9), %s482_s16, 4294967040  ;;  %p2605_p3 = scmp.ne.s32.totalorder %s2120_s13, 0 }
  0xd7   : > { %539 = sbr.rel (%p2605_p3) target bundleno = 224 (0xe0), region = 92 }
  0xdc   : > { %v540_v0 = vld [vmem:[#allocation2] sm:$0xff]  ;;  %vm544_vm0 = vcmask 261120   ;;  %v541_v1 = vld [vmem:[#allocation2 + $0x8] sm:$0xff] }
  0xdd   : > { %v542_v2 = vmul.f32 5.656854, %v540_v0  ;;  %v543_v3 = vmul.f32 5.656854, %v541_v1 }
  0xdf   : > { %545 = vst.msk [vmem:[#allocation16] sm:$0xff] %vm544_vm0, %v542_v2  ;;  %546 = vst.msk [vmem:[#allocation16 + $0x8] sm:$0xff] %vm544_vm0, %v543_v3 }
  0xe0 PF: > { %vm553_vm1 = vcmask 261120   ;;  %v1686_v10 = vld [vmem:[%s2385_s18 + $0x14] ss:$8 sps:$4 sm:$0xff]   ;;  %v1688_v11 = vld [vmem:[%s2385_s18 + $0x10] ss:$8 sps:$4 sm:$0xff]   ;;  %v2040_v13 = vmov 0   ;;  %v569_v21 = vlaneseq }
  0xe1   : > { %v1689_v12 = vld [vmem:[%s2385_s18 + $0x4] ss:$8 sps:$4 sm:$0xff]   ;;  %623 = vmatprep.subr.bf16.mxu0 %v1686_v10  ;;  %643 = vmatprep.mubr.bf16.mxu0 %v2040_v13  ;;  %v1691_v14 = vld [vmem:[%s2385_s18] ss:$8 sps:$4 sm:$0xff]   ;;  %s2041_s19 = smov 96   ;;  %vm670_vm2 = vcmask 785408  }
  0xe2   : > { %624 = vmatpush1.bf16.msra.mxu0 %v1688_v11  ;;  %v2421_v22 = vshrl.u32 %v569_v21, 7  ;;  %v2426_v25 = vld [vmem:[%s485_s30] sm:$0xff]  ;;  %v550_v35 = vld [vmem:[%s485_s30 + $0x8] sm:$0xff]  ;;  %s2042_s23 = smov 64   ;;  %v2043_v56 = vmov 0.0   ;;  %vm2044_vm3 = vmmov 0  }
  0xe3   : > { %625 = vmatprep.subr.bf16.mxu0 %v1689_v12  ;;  %v654_v48 = vld [vmem:[#allocation5] sm:$0xff]  ;;  %v655_v53 = vld [vmem:[#allocation5 + $0x8] sm:$0xff]  ;;  %1523 = vmatprep.subr.bf16.mxu1 %v2043_v56  ;;  %s2045_s21 = smov 80   ;;  %s2046_s26 = smov 112   ;;  %vm697_vm4 = vcmask 130048   ;;  %v688_v11 = vld [vmem:[#allocation7 + $0x8] sm:$0xff] }
  0xe4   : > { %v571_v23 = vsub.s32 1, %v2421_v22  ;;  %v582_v33 = vsub.s32 0, %v2421_v22  ;;  %1525 = vmatprep.mubr.msk.bf16.mxu1 %vm2044_vm3, %v2043_v56  ;;  %s2047_s4 = smov 48   ;;  %p1493_p6 = scmp.ge.s32.totalorder %s2120_s13, 1 }
  0xe6   : > { %v2407_v4 = vld [vmem:[#allocation16] sm:$0xff]  ;;  %v2409_v5 = vld [vmem:[#allocation16 + $0x8] sm:$0xff]  ;;  %626 = vmatpush1.bf16.msra.mxu0 %v1691_v14  ;;  %v572_v27 = vrot.slane %v2426_v25, %v571_v23  ;;  %v583_v34 = vrot.slane %v2426_v25, %v582_v33  ;;  %v587_v38 = vrot.slane %v550_v35, %v582_v33 }
  0xe7   : > { %v551_v6 = vmul.f32 %v2407_v4, %v2407_v4  ;;  %v552_v7 = vmul.f32 %v2409_v5, %v2409_v5  ;;  %1529 = vmatprep.subr.bf16.mxu0 %v2043_v56 }
  0xe9   : > { %v554_v8 = vsel %vm553_vm1, %v551_v6, 0.0  ;;  %v557_v9 = vsel %vm553_vm1, %v552_v7, 0.0  ;;  %v687_v7 = vld [vmem:[#allocation7] sm:$0xff] }
  0xea   : > { %555 = vadd.xlane.f32.xlu0 %v554_v8 }
  0xee   : > { %558 = vadd.xlane.f32.xlu0 %v557_v9 }
 0x173   : > { %v556_v15 = vpop.xlane.xlu0 %555 }
 0x174   : > { %v561_v16 = vmul.f32 0.03125, %v556_v15 }
 0x176   : > { %v563_v17 = vadd.f32 1e-06, %v561_v16 }
 0x177   : > { %v559_v18 = vpop.xlane.xlu0 %558 }
 0x178   : > { %1698 = vrsqrt.f32 %v563_v17  ;;  %v562_v19 = vmul.f32 0.03125, %v559_v18 }
 0x17a   : > { %v564_v20 = vadd.f32 1e-06, %v562_v19 }
 0x17c   : > { %1700 = vrsqrt.f32 %v564_v20 }
 0x185   : > { %v1699_v24 = vpop.eup %1698 }
 0x186   : > { %v567_v26 = vmul.f32 %v1699_v24, %v2407_v4 }
 0x188   : > { %v573_v30 = vmul.f32 %v572_v27, %v567_v26 }
 0x189   : > { %v1701_v28 = vpop.eup %1700 }
 0x18a   : > { %v568_v29 = vmul.f32 %v1701_v28, %v2409_v5 }
 0x18c   : > { %v574_v31 = vmul.f32 %v572_v27, %v568_v29 }
 0x18e   : > { %v575_v32 = vpack.c.bf16 %v574_v31, %v573_v30 }
 0x190   : > { %1478 = vmatmul.mubr.msk.bf16.vlgmr.msra.gmra.mxu0 %vm553_vm1, %v575_v32 }
 0x191   : > { %1531 = vmatprep.mubr.msk.bf16.mxu0 %vm2044_vm3, %v2043_v56 }
 0x250   : > { %v645_v36 = vpop.f32.mrf.mxu0 }
 0x251   : > { %v646_v37 = vadd.f32 %v645_v36, %v583_v34 }
 0x252   : > { %v647_v39 = vpop.f32.mrf.mxu0 }
 0x253   : > { %662 = vrot.lane.b32.xlu1 %v646_v37, %s2041_s19  ;;  %v648_v41 = vadd.f32 %v647_v39, %v587_v38  ;;  %v656_v58 = vmul.f32 %v654_v48, %v646_v37 }
 0x254   : > { %v649_v40 = vpop.f32.mrf.mxu0 }
 0x255   : > { %v650_v42 = vadd.f32 %v649_v40, %v583_v34 }
 0x256   : > { %v651_v43 = vpop.f32.mrf.mxu0 }
 0x257   : > { %666 = vrot.lane.b32.xlu0 %v650_v42, %s2041_s19  ;;  %664 = vrot.lane.b32.xlu1 %v648_v41, %s2041_s19  ;;  %v2439_v44 = vpack.c.bf16 %v650_v42, %v646_v37  ;;  %v652_v45 = vadd.f32 %v651_v43, %v587_v38  ;;  %v657_v59 = vmul.f32 %v655_v53, %v650_v42 }
 0x25b   : > { %668 = vrot.lane.b32.xlu1 %v652_v45, %s2041_s19 }
 0x2c5   : > { %v663_v46 = vpop.permute.xlu1 %662 }
 0x2c9   : > { %v665_v47 = vpop.permute.xlu1 %664  ;;  %v667_v51 = vpop.permute.xlu0 %666 }
 0x2ca   : > { %v671_v49 = vsel %vm670_vm2, %v663_v46, %v665_v47 }
 0x2cb   : > { %v675_v50 = vmul.f32 %v671_v49, %v654_v48 }
 0x2cd   : > { %679 = vrot.lane.b32.xlu1 %v675_v50, %s2042_s23  ;;  %v669_v52 = vpop.permute.xlu1 %668 }
 0x2ce   : > { %v672_v54 = vsel %vm670_vm2, %v667_v51, %v669_v52 }
 0x2cf   : > { %v676_v55 = vmul.f32 %v672_v54, %v655_v53 }
 0x2d1   : > { %681 = vrot.lane.b32.xlu1 %v676_v55, %s2042_s23 }
 0x33f   : > { %v680_v57 = vpop.permute.xlu1 %679 }
 0x340   : > { %v685_v61 = vadd.f32 %v680_v57, %v656_v58 }
 0x343   : > { %v682_v60 = vpop.permute.xlu1 %681 }
 0x344   : > { %v686_v62 = vadd.f32 %v682_v60, %v657_v59 }
 0x346   : > { %v693_v63 = vpack.c.bf16 %v686_v62, %v685_v61 }
 0x348   : > { %695 = vrot.lane.b32.xlu1 %v693_v63, %s2041_s19 }
 0x34c   : > { %820 = vrot.lane.b32.xlu1 %v693_v63, %s2045_s21 }
 0x350   : > { %818 = vrot.lane.b32.xlu1 %v693_v63, %s2046_s26 }
 0x3ba   : > { %v696_v0 = vpop.permute.xlu1 %695 }
 0x3bb   : > { %v702_v1 = vsel %vm697_vm4, %v696_v0, 0  ;;  %v1692_v0 = vld [vmem:[%s458_s27] sm:$0xff]  }
 0x3bc   : > { %1524 = vmatpush3.bf16.xpose.msra.mxu1 %v702_v1  ;;  %v1693_v1 = vld [vmem:[%s458_s27 + $0x8] sm:$0xff]  }
 0x3bd   : > { %1535 = vmatprep.subr.bf16.mxu1 %v2043_v56 }
 0x3be   : > { %v821_v2 = vpop.permute.xlu1 %820 }
 0x3bf   : > { %v826_v3 = vsel %vm697_vm4, %v821_v2, 0 }
 0x3c2   : > { %v819_v6 = vpop.permute.xlu1 %818 }
 0x3c3   : > { %1526 = vmatmul.mubr.msk.bf16.vlgmr.msra.gmra.mxu1 %vm697_vm4, %v693_v63 }
 0x3c4   : > { %1536 = vmatpush3.bf16.xpose.msra.mxu1 %v826_v3  ;;  %1537 = vmatprep.mubr.msk.bf16.mxu1 %vm2044_vm3, %v2043_v56 }
 0x3c5   : > { %1547 = vmatprep.subr.bf16.mxu1 %v2043_v56 }
 0x3cb   : > { %1538 = vmatmul.mubr.msk.bf16.vlgmr.msra.gmra.mxu1 %vm697_vm4, %v819_v6 }
 0x3cc   : > { %1549 = vmatprep.mubr.msk.bf16.mxu1 %vm2044_vm3, %v2043_v56  ;;  %1548 = vmatpush3.bf16.msra.mxu1 %v1693_v1 }
 0x3cd   : > { %1559 = vmatprep.subr.bf16.mxu1 %v2043_v56 }
 0x483   : > { %v738_v8 = vpop.f32.mrf.mxu1 }
 0x484   : > { %v739_v9 = vadd.f32 %v738_v8, %v687_v7 }
 0x485   : > { %v1527_v10 = vpop.f32.mrf.mxu1 }
 0x486   : > { %v745_v12 = vsel %vm697_vm4, %v739_v9, -inf }
 0x487   : > { %746 = vmax.xlane.f32.xlu0 %v745_v12  ;;  %v741_v13 = vpop.f32.mrf.mxu1 }
 0x488   : > { %v742_v14 = vadd.f32 %v741_v13, %v688_v11 }
 0x489   : > { %v1528_v15 = vpop.f32.mrf.mxu1 }
 0x48a   : > { %v748_v16 = vsel %vm697_vm4, %v742_v14, -inf }
 0x48b   : > { %749 = vmax.xlane.f32.xlu1 %v748_v16  ;;  %v862_v17 = vpop.f32.mrf.mxu1 }
 0x48c   : > { %v863_v18 = vadd.f32 %v862_v17, %v687_v7  ;;  %v1044_v17 = vsub.s32 3, %v2421_v22 }
 0x48d   : > { %v1539_v19 = vpop.f32.mrf.mxu1 }
 0x48e   : > { %v869_v20 = vsel %vm697_vm4, %v863_v18, -inf }
 0x48f   : > { %870 = vmax.xlane.f32.xlu0 %v869_v20  ;;  %v865_v21 = vpop.f32.mrf.mxu1 }
 0x490   : > { %v866_v23 = vadd.f32 %v865_v21, %v688_v11  ;;  %v1045_v21 = vrot.slane %v2426_v25, %v1044_v17 }
 0x491   : > { %v1540_v24 = vpop.f32.mrf.mxu1 }
 0x492   : > { %v872_v26 = vsel %vm697_vm4, %v866_v23, -inf }
 0x493   : > { %873 = vmax.xlane.f32.xlu0 %v872_v26 }
 0x510   : > { %v747_v27 = vpop.xlane.xlu0 %746 }
 0x511   : > { %v751_v28 = vsub.f32 %v739_v9, %v747_v27 }
 0x513   : > { %v753_v29 = vmul.f32 1.442695, %v751_v28 }
 0x514   : > { %v750_v30 = vpop.xlane.xlu1 %749 }
 0x515   : > { %1702 = vpow2.f32 %v753_v29  ;;  %v752_v31 = vsub.f32 %v742_v14, %v750_v30 }
 0x517   : > { %v755_v32 = vmul.f32 1.442695, %v752_v31 }
 0x518   : > { %v871_v33 = vpop.xlane.xlu0 %870 }
 0x519   : > { %1704 = vpow2.f32 %v755_v32  ;;  %v875_v34 = vsub.f32 %v863_v18, %v871_v33 }
 0x51b   : > { %v877_v35 = vmul.f32 1.442695, %v875_v34 }
 0x51c   : > { %v874_v36 = vpop.xlane.xlu0 %873 }
 0x51d   : > { %1706 = vpow2.f32 %v877_v35  ;;  %v876_v37 = vsub.f32 %v866_v23, %v874_v36  ;;  %v1694_v36 = vld [vmem:[%s467_s24 + $0x8] sm:$0xff]  }
 0x51f   : > { %v879_v38 = vmul.f32 1.442695, %v876_v37 }
 0x521   : > { %1708 = vpow2.f32 %v879_v38 }
 0x522   : > { %v1703_v39 = vpop.eup %1702 }
 0x523   : > { %v757_v40 = vsel %vm697_vm4, %v1703_v39, 0.0 }
 0x524   : > { %758 = vadd.xlane.f32.xlu1 %v757_v40 }
 0x526   : > { %v1705_v41 = vpop.eup %1704 }
 0x527   : > { %v760_v42 = vsel %vm697_vm4, %v1705_v41, 0.0 }
 0x528   : > { %761 = vadd.xlane.f32.xlu0 %v760_v42  ;;  %v1066_v42 = vsub.s32 2, %v2421_v22 }
 0x52a   : > { %v1707_v43 = vpop.eup %1706 }
 0x52b   : > { %v881_v45 = vsel %vm697_vm4, %v1707_v43, 0.0 }
 0x52c   : > { %882 = vadd.xlane.f32.xlu1 %v881_v45 }
 0x52e   : > { %v1709_v46 = vpop.eup %1708 }
 0x52f   : > { %v884_v47 = vsel %vm697_vm4, %v1709_v46, 0.0 }
 0x530   : > { %885 = vadd.xlane.f32.xlu0 %v884_v47 }
 0x53d   : > { %770 = vrot.lane.b32.xlu1 %v2439_v44, %s2042_s23 }
 0x546   : > { %892 = vrot.lane.b32.xlu0 %v2439_v44, %s2047_s4 }
 0x5ad   : > { %v759_v48 = vpop.xlane.xlu1 %758 }
 0x5ae   : > { %1710 = vrcp.f32 %v759_v48 }
 0x5b1   : > { %v762_v49 = vpop.xlane.xlu0 %761 }
 0x5b2   : > { %1712 = vrcp.f32 %v762_v49 }
 0x5b5   : > { %v883_v50 = vpop.xlane.xlu1 %882 }
 0x5b6   : > { %1714 = vrcp.f32 %v883_v50 }
 0x5b9   : > { %v886_v51 = vpop.xlane.xlu0 %885  ;;  %v771_v52 = vpop.permute.xlu1 %770 }
 0x5ba   : > { %1716 = vrcp.f32 %v886_v51  ;;  %1530 = vmatpush3.bf16.msra.mxu0 %v771_v52  ;;  %v1696_v52 = vld [vmem:[%s476_s1 + $0x8] sm:$0xff]  }
 0x5bb   : > { %1541 = vmatprep.subr.bf16.mxu0 %v2043_v56  ;;  %v1711_v53 = vpop.eup %1710 }
 0x5bc   : > { %v765_v55 = vmul.f32 %v1711_v53, %v1703_v39  ;;  %v1077_v53 = vsub.s32 4, %v2421_v22 }
 0x5bd   : > { %v893_v44 = vpop.permute.xlu0 %892 }
 0x5bf   : > { %v1713_v54 = vpop.eup %1712 }
 0x5c0   : > { %v766_v57 = vmul.f32 %v1713_v54, %v1705_v41  ;;  %v1697_v54 = vld [vmem:[%s476_s1] sm:$0xff]  }
 0x5c2   : > { %v767_v58 = vpack.c.bf16 %v766_v57, %v765_v55  ;;  %v1078_v55 = vrot.slane %v2426_v25, %v1077_v53 }
 0x5c3   : > { %v1715_v59 = vpop.eup %1714 }
 0x5c4   : > { %1532 = vmatmul.mubr.msk.bf16.vlgmr.msra.gmra.mxu0 %vm697_vm4, %v767_v58  ;;  %v889_v61 = vmul.f32 %v1715_v59, %v1707_v43 }
 0x5c5   : > { %1542 = vmatpush3.bf16.msra.mxu0 %v893_v44  ;;  %1543 = vmatprep.mubr.msk.bf16.mxu0 %vm2044_vm3, %v2043_v56 }
 0x5c6   : > { %1553 = vmatprep.subr.bf16.mxu0 %v2043_v56 }
 0x5c7   : > { %v1717_v60 = vpop.eup %1716 }
 0x5c8   : > { %v890_v62 = vmul.f32 %v1717_v60, %v1709_v46  ;;  %v1067_v46 = vrot.slane %v2426_v25, %v1066_v42 }
 0x5ca   : > { %v891_v63 = vpack.c.bf16 %v890_v62, %v889_v61 }
 0x5cc   : > { %1544 = vmatmul.mubr.msk.bf16.vlgmr.msra.gmra.mxu0 %vm697_vm4, %v891_v63 }
 0x5cd   : > { %1555 = vmatprep.mubr.msk.bf16.mxu0 %vm2044_vm3, %v2043_v56  ;;  %1554 = vmatpush3.bf16.msra.mxu0 %v1692_v0 }
 0x5ce   : > { %1567 = vmatprep.subr.bf16.mxu0 %v2043_v56 }
 0x684   : > { %v810_v2 = vpop.f32.mrf.mxu0 }
 0x686   : > { %v1533_v3 = vpop.f32.mrf.mxu0 }
 0x688   : > { %v813_v6 = vpop.f32.mrf.mxu0 }
 0x689   : > { %v817_v7 = vpack.c.bf16 %v813_v6, %v810_v2 }
 0x68a   : > { %v1534_v8 = vpop.f32.mrf.mxu0 }
 0x68b   : > { %1556 = vmatmul.mubr.msk.bf16.vlgmr.msra.gmra.mxu0 %vm697_vm4, %v817_v7 }
 0x68c   : > { %v932_v9 = vpop.f32.mrf.mxu0  ;;  %1571 = vmatprep.mubr.msk.bf16.mxu0 %vm2044_vm3, %v2043_v56  ;;  %1568 = vmatpush3.bf16.msra.mxu0 %v1696_v52 }
 0x68d   : > { %1569 = vmatprep.subr.bf16.mxu0 %v2043_v56 }
 0x68e   : > { %v1545_v10 = vpop.f32.mrf.mxu0 }
 0x690   : > { %v935_v11 = vpop.f32.mrf.mxu0  ;;  %1570 = vmatpush3.bf16.msra.mxu0 %v1697_v54 }
 0x691   : > { %v939_v12 = vpack.c.bf16 %v935_v11, %v932_v9 }
 0x692   : > { %v1546_v13 = vpop.f32.mrf.mxu0 }
 0x693   : > { %1550 = vmatmul.mubr.msk.bf16.vlgmr.msra.gmra.mxu1 %vm697_vm4, %v939_v12 }
 0x694   : > { %1563 = vmatprep.mubr.msk.bf16.mxu1 %vm2044_vm3, %v2043_v56  ;;  %1560 = vmatpush3.bf16.msra.mxu1 %v1694_v36 }
 0x695   : > { %1561 = vmatprep.subr.bf16.mxu1 %v2043_v56 }
 0x74b   : > { %v1033_v14 = vpop.f32.mrf.mxu0 }
 0x74d   : > { %v1557_v15 = vpop.f32.mrf.mxu0 }
 0x74f   : > { %v1036_v16 = vpop.f32.mrf.mxu0 }
 0x751   : > { %v1558_v18 = vpop.f32.mrf.mxu0 }
 0x753   : > { %v983_v19 = vpop.f32.mrf.mxu1 }
 0x754   : > { %v1034_v20 = vadd.f32 %v1033_v14, %v983_v19 }
 0x755   : > { %v1551_v23 = vpop.f32.mrf.mxu1 }
 0x756   : > { %v1040_v24 = vadd.f32 %v1034_v20, %v2407_v4  ;;  %v1695_v4 = vld [vmem:[%s467_s24] sm:$0xff]   ;;  %v1170_v23 = vsub.s32 5, %v2421_v22 }
 0x757   : > { %v986_v26 = vpop.f32.mrf.mxu1  ;;  %1562 = vmatpush3.bf16.msra.mxu1 %v1695_v4 }
 0x758   : > { %v1037_v27 = vadd.f32 %v1036_v16, %v986_v26  ;;  %v1046_v28 = vadd.f32 %v1045_v21, %v1040_v24  ;;  %v1171_v24 = vrot.slane %v2426_v25, %v1170_v23 }
 0x759   : > { %v1552_v29 = vpop.f32.mrf.mxu1 }
 0x75a   : > { %v1041_v30 = vadd.f32 %v1037_v27, %v2409_v5  ;;  %v1048_v31 = vmul.f32 %v1046_v28, %v1046_v28 }
 0x75c   : > { %v1050_v32 = vsel %vm553_vm1, %v1048_v31, 0.0  ;;  %v1047_v33 = vadd.f32 %v1045_v21, %v1041_v30 }
 0x75d   : > { %1051 = vadd.xlane.f32.xlu1 %v1050_v32 }
 0x75e   : > { %v1049_v34 = vmul.f32 %v1047_v33, %v1047_v33 }
 0x760   : > { %v1053_v35 = vsel %vm553_vm1, %v1049_v34, 0.0 }
 0x761   : > { %1054 = vadd.xlane.f32.xlu0 %v1053_v35 }
 0x7e6   : > { %v1052_v37 = vpop.xlane.xlu1 %1051 }
 0x7e7   : > { %v1056_v38 = vmul.f32 0.03125, %v1052_v37 }
 0x7e9   : > { %v1058_v5 = vadd.f32 1e-06, %v1056_v38 }
 0x7ea   : > { %v1055_v39 = vpop.xlane.xlu0 %1054 }
 0x7eb   : > { %1718 = vrsqrt.f32 %v1058_v5  ;;  %v1057_v40 = vmul.f32 0.03125, %v1055_v39 }
 0x7ed   : > { %v1059_v41 = vadd.f32 1e-06, %v1057_v40 }
 0x7ef   : > { %1720 = vrsqrt.f32 %v1059_v41 }
 0x7f8   : > { %v1719_v43 = vpop.eup %1718 }
 0x7f9   : > { %v1062_v45 = vmul.f32 %v1719_v43, %v1046_v28 }
 0x7fb   : > { %v1068_v49 = vmul.f32 %v1067_v46, %v1062_v45 }
 0x7fc   : > { %v1721_v47 = vpop.eup %1720 }
 0x7fd   : > { %v1063_v48 = vmul.f32 %v1721_v47, %v1047_v33 }
 0x7ff   : > { %v1069_v50 = vmul.f32 %v1067_v46, %v1063_v48 }
 0x801   : > { %v1070_v51 = vpack.c.bf16 %v1069_v50, %v1068_v49 }
 0x803   : > { %1564 = vmatmul.mubr.msk.bf16.vlgmr.msra.gmra.mxu1 %vm553_vm1, %v1070_v51 }
 0x8c3   : > { %v1128_v57 = vpop.f32.mrf.mxu1 }
 0x8c4   : > { %v1129_v58 = vadd.f32 %v1128_v57, %v1078_v55 }
 0x8c5   : > { %v1565_v44 = vpop.f32.mrf.mxu1 }
 0x8c6   : > { %1155 = vrot.lane.b32.xlu1 %v1129_v58, %s2041_s19  ;;  %v1137_v62 = vmul.f32 0.044715, %v1129_v58  ;;  %v1135_v13 = vmul.f32 0.5, %v1129_v58 }
 0x8c7   : > { %v1131_v59 = vpop.f32.mrf.mxu1 }
 0x8c8   : > { %v1132_v60 = vadd.f32 %v1131_v59, %v1078_v55  ;;  %v1139_v0 = vmul.f32 %v1137_v62, %v1129_v58 }
 0x8c9   : > { %v1566_v61 = vpop.f32.mrf.mxu1 }
 0x8ca   : > { %1157 = vrot.lane.b32.xlu0 %v1132_v60, %s2041_s19  ;;  %v1138_v63 = vmul.f32 0.044715, %v1132_v60  ;;  %v1141_v56 = vmul.f32 %v1139_v0, %v1129_v58  ;;  %v1136_v14 = vmul.f32 0.5, %v1132_v60 }
 0x8cc   : > { %v1140_v1 = vmul.f32 %v1138_v63, %v1132_v60  ;;  %v1143_v3 = vadd.f32 %v1141_v56, %v1129_v58 }
 0x8ce   : > { %v1142_v2 = vmul.f32 %v1140_v1, %v1132_v60  ;;  %v1145_v7 = vmul.f32 0.7978846, %v1143_v3 }
 0x8d0   : > { %v1144_v6 = vadd.f32 %v1142_v2, %v1132_v60  ;;  %1722 = vtanh.f32 %v1145_v7 }
 0x8d2   : > { %v1146_v8 = vmul.f32 0.7978846, %v1144_v6 }
 0x8d4   : > { %1724 = vtanh.f32 %v1146_v8 }
 0x8dd   : > { %v1723_v9 = vpop.eup %1722 }
 0x8de   : > { %v1149_v11 = vadd.f32 1.0, %v1723_v9 }
 0x8e0   : > { %v1151_v16 = vmul.f32 %v1149_v11, %v1135_v13 }
 0x8e1   : > { %v1725_v10 = vpop.eup %1724 }
 0x8e2   : > { %v1150_v12 = vadd.f32 1.0, %v1725_v10 }
 0x8e4   : > { %v1152_v17 = vmul.f32 %v1150_v12, %v1136_v14 }
 0x938   : > { %v1156_v15 = vpop.permute.xlu1 %1155 }
 0x939   : > { %v1161_v19 = vmul.f32 %v1156_v15, %v1151_v16 }
 0x93c   : > { %v1158_v18 = vpop.permute.xlu0 %1157 }
 0x93d   : > { %v1162_v20 = vmul.f32 %v1158_v18, %v1152_v17 }
 0x93f   : > { %v1163_v21 = vpack.c.bf16 %v1162_v20, %v1161_v19 }
 0x941   : > { %1572 = vmatmul.mubr.msk.bf16.vlgmr.msra.gmra.mxu0 %vm553_vm1, %v1163_v21 }
 0xa01   : > { %v1221_v26 = vpop.f32.mrf.mxu0 }
 0xa02   : > { %v1222_v27 = vadd.f32 %v1221_v26, %v1171_v24 }
 0xa03   : > { %v1573_v28 = vpop.f32.mrf.mxu0 }
 0xa04   : > { %v1228_v29 = vadd.f32 %v1222_v27, %v1068_v49  ;;  %1233 = sbr.rel (%p1493_p6) target bundleno = 2571 (0xa0b), region = 96 }
 0xa05   : > { %v1224_v30 = vpop.f32.mrf.mxu0 }
 0xa06   : > { %v1225_v31 = vadd.f32 %v1224_v30, %v1171_v24 }
 0xa07   : > { %v1574_v32 = vpop.f32.mrf.mxu0 }
 0xa08   : > { %v1229_v33 = vadd.f32 %v1225_v31, %v1069_v50 }
 0xa09   : > { %1234 = vst.msk [vmem:[#allocation16] sm:$0xff] %vm553_vm1, %v1228_v29 }
 0xa0a   : > { %1235 = vst.msk [vmem:[#allocation16 + $0x8] sm:$0xff] %vm553_vm1, %v1229_v33 }
 0xa0b PF: > { %p1494_p7 = scmp.ne.s32.totalorder %s2120_s13, 1 }
 0xa0c   : > { %s2606_s22 = sld [smem:[#allocation27_spill]] (!%p1494_p7) }
 0xa0d   : > { %1239 = sbr.rel (%p1494_p7) target bundleno = 2746 (0xaba), region = 100 }
 0xa12   : > { %v1240_v22 = vmul.f32 %v1228_v29, %v1228_v29  ;;  %v1241_v25 = vmul.f32 %v1229_v33, %v1229_v33  ;;  %v1495_v41 = vld [vmem:[%s2606_s22] ss:$0 sm:$0xff] }
 0xa14   : > { %v1242_v34 = vsel %vm553_vm1, %v1240_v22, 0.0  ;;  %v1245_v35 = vsel %vm553_vm1, %v1241_v25, 0.0 }
 0xa15   : > { %1243 = vadd.xlane.f32.xlu0 %v1242_v34 }
 0xa19   : > { %1246 = vadd.xlane.f32.xlu0 %v1245_v35 }
 0xa9e   : > { %v1244_v36 = vpop.xlane.xlu0 %1243 }
 0xa9f   : > { %v1248_v4 = vmul.f32 0.03125, %v1244_v36 }
 0xaa1   : > { %v1250_v37 = vadd.f32 1e-06, %v1248_v4 }
 0xaa2   : > { %v1247_v38 = vpop.xlane.xlu0 %1246 }
 0xaa3   : > { %1726 = vrsqrt.f32 %v1250_v37  ;;  %v1249_v5 = vmul.f32 0.03125, %v1247_v38 }
 0xaa5   : > { %v1251_v39 = vadd.f32 1e-06, %v1249_v5 }
 0xaa7   : > { %1728 = vrsqrt.f32 %v1251_v39 }
 0xab0   : > { %v1727_v40 = vpop.eup %1726 }
 0xab1   : > { %v1254_v42 = vmul.f32 %v1727_v40, %v1228_v29 }
 0xab3   : > { %v1263_v43 = vmul.f32 %v1495_v41, %v1254_v42 }
 0xab4   : > { %v1729_v45 = vpop.eup %1728 }
 0xab5   : > { %1265 = vst.msk [vmem:[#allocation16] sm:$0xff] %vm553_vm1, %v1263_v43  ;;  %v1255_v46 = vmul.f32 %v1729_v45, %v1229_v33 }
 0xab7   : > { %v1264_v47 = vmul.f32 %v1495_v41, %v1255_v46 }
 0xab9   : > { %1266 = vst.msk [vmem:[#allocation16 + $0x8] sm:$0xff] %vm553_vm1, %v1264_v47 }
 0xaba PF: > { %p1634_p11 = scmp.eq.s32.totalorder %s2120_s13, 1  ;;  %s2048_s25 = smov [#allocation16]  }
 0xabb   : > { %s1273_s29 = sshll.u32 %s2048_s25, 4  ;;  %s1274_s29 = int_to_ptr.vmem [resolvable:$true] %s1273_s29 }
 0xabc   : > { %s1948_s11 = scalar_lea.vmem %s1274_s29, 256  ;;  %p1955_p5 = scmp.lt.s32.totalorder %s1274_s29, %s1274_s29 }
 0xabd   : > { %p1949_p1 = scmp.ne.s32.totalorder %s1274_s29, %s1948_s11  ;;  %p1956_p8 = scmp.lt.s32.totalorder %s1948_s11, %s1948_s11 }
 0xabf   : > { %p1950_p12 = pnand %p1949_p1, %p1634_p11  ;;  %p1957_p10 = por %p1956_p8, %p1955_p5 }
 0xac1   : > { %p1951_p4 = pneg %p1950_p12 }
 0xac3   : > { %p1958_p2 = pnand %p1957_p10, %p1951_p4 }
 0xac5   : > { %1961 = shalt.err (!%p1958_p2)
}
 0xac6   : > { %s2049_s14 = smov 128   ;;  %s2050_s17 = smov 8  }
 0xac7   : > { %s2607_s18 = sld [smem:[#allocation29_spill]] }
 0xacd   : > { %1598 = dma.vmem_to_hbm [thread:$0]  (%p1634_p11), %s1274_s29, 256, %s2607_s18, [#allocation4], %s2049_s14, %s2049_s14, %s2050_s17  }
 0xace   : > { %2009 = dma.done.wait (%p1634_p11), [#allocation4], 256  }
 0xacf   : > { %2011 = vsyncadd (%p1634_p11), [#allocation4], 4294967040 }
 0xad0 PF: > { %s2608_s12 = sld [smem:[#allocation24_spill]]  ;;  %s2611_s30 = smov %s2018_s10 }
 0xad1   : > { %s2609_s15 = sld [smem:[#allocation23_spill]] }
 0xad2   : > { %s2610_s11 = sld [smem:[#allocation25_spill]] }
 0xad6   : > { %p28_p0 = scmp.ge.s32.totalorder %s2608_s12, 4  }
 0xad7   : > { %s2612_s10 = smov %s2609_s15 }
 0xad8   :  { %30 = sbr.rel (!%p28_p0) target bundleno = 15 (0xf), region = 166 }
 0xadd   :  { %1289 = vsyncpa [#allocation3], 1 }
 0xade   :  { %1291 = vsyncpa [#allocation3 + $0x1], 1 }
 0xadf   :  { %1292 = vsyncpa [#allocation6], 1 }
 0xae0   :  { %1293 = vsyncpa [#allocation9], 1 }
 0xae1   :  { %1295 = vsyncpa [#allocation9 + $0x1], 1 }
 0xae2   :  { %1296 = vsyncpa [#allocation12], 1 }
 0xae3   :  { %1298 = vsyncpa [#allocation12 + $0x1], 1 }
 0xae4   :  { %1299 = vsyncpa [#allocation15], 1 }
 0xae5   :  { %1301 = vsyncpa [#allocation15 + $0x1], 1 }
 0xae6   :  { %1302 = vsyncpa [#allocation4], 1 }
 0xae7   :  { %1304 = vsyncpa [#allocation4 + $0x1], 1 }

</bundles_post_ra>
